<compile_context>
chip_gen: v6e
topology: v6e:2x2x1
jax: 0.10.0
libtpu: 0.0.40
codegen_flags: <defaults>
</compile_context>

<pallas_src>
import functools

import numpy as np
import jax
import jax.numpy as jnp
from jax.experimental import pallas as pl
from jax.experimental.pallas import tpu as pltpu


def _pool_rows(y, n_windows, p):
    """Max-pool (kernel = stride = p) along the sublane axis of y: (L, NB).
    Returns a list of n_windows rows, each of shape (1, NB)."""
    rows = []
    for j in range(n_windows):
        m = y[j * p:j * p + 1, :]
        for i in range(1, p):
            m = jnp.maximum(m, y[j * p + i:j * p + i + 1, :])
        rows.append(m)
    return rows


def _dapredictor_kernel(xp_ref, w1_ref, b1_ref, w2_ref, b2_ref, wfc_ref,
                        bfc_ref, out_ref, *, F, K, p, p_w, L1, L2, L3, L4):
    # xp_ref : (W+2, NB)   VMEM  zero-padded input, batch on lanes
    # w1_ref : (F, K)      SMEM  conv1 weights (in_ch == 1)
    # b1_ref : (F,)        SMEM
    # w2_ref : (F, F*K)    SMEM  conv2 weights, indexed [fo, fi*K + k]
    # b2_ref : (F,)        SMEM
    # wfc_ref: (p_w, F*L4) SMEM  fc weights, torch layout [pw, f*L4 + l4]
    # bfc_ref: (p_w,)      SMEM
    # out_ref: (p_w, NB)   VMEM  lane-dense output (batch on lanes)
    xp = xp_ref[...]                                       # (W+2, NB)
    NB = xp.shape[-1]
    zrow = jnp.zeros((1, NB), jnp.float32)

    # ---- conv1 (1 -> F, padding=1) + ReLU + maxpool1; pad rows for conv2.
    x2p = []                                               # F slabs of (L2+2, NB)
    for f in range(F):
        acc = xp[0:L1, :] * w1_ref[f, 0]
        for k in range(1, K):
            acc = acc + xp[k:k + L1, :] * w1_ref[f, k]
        y1 = jnp.maximum(acc + b1_ref[f], 0.0)             # (L1, NB)
        rows = _pool_rows(y1, L2, p)                       # L2 x (1, NB)
        x2p.append(jnp.concatenate([zrow] + rows + [zrow], axis=0))

    # ---- conv2 (F -> F, padding=1) + ReLU + maxpool2 (kept as rows).
    # For F this small the scalar-weight VPU FMA path beats feeding the MXU
    # 4x4 contractions.  (For F >= ~32 an im2col matmul would be preferred.)
    pooled2 = []                                           # pooled2[fo][l4]: (1, NB)
    for fo in range(F):
        acc = None
        for fi in range(F):
            for k in range(K):
                term = x2p[fi][k:k + L3, :] * w2_ref[fo, fi * K + k]
                acc = term if acc is None else acc + term
        y2 = jnp.maximum(acc + b2_ref[fo], 0.0)            # (L3, NB)
        pooled2.append(_pool_rows(y2, L4, p))

    # ---- fully connected + ReLU (fused with maxpool2 rows).
    out_rows = []
    for pw in range(p_w):
        acc = None
        for f in range(F):
            for l4 in range(L4):
                term = pooled2[f][l4] * wfc_ref[pw, f * L4 + l4]
                acc = term if acc is None else acc + term
        out_rows.append(jnp.maximum(acc + bfc_ref[pw], 0.0))
    out_ref[...] = jnp.concatenate(out_rows, axis=0)       # (p_w, NB)


def _round_up(a, b):
    return (a + b - 1) // b * b


def dapredictor_forward(x, w1, b1, w2, b2, wfc, bfc, *, kernel_size_pool,
                        batch_block=None):
    """x: (nb_ts, 1, w) float32; params follow torch shape conventions.
    Returns (nb_ts, p_w) float32."""
    N, Cin, W = x.shape
    assert Cin == 1
    F, _, K = w1.shape
    p = kernel_size_pool
    L1 = W + 2 - K + 1          # conv1 output length (padding=1)
    L2 = L1 // p                # after maxpool1
    L3 = L2 + 2 - K + 1         # conv2 output length (padding=1)
    L4 = L3 // p                # after maxpool2
    p_w, fc_in = wfc.shape
    assert fc_in == F * L4, "fc in_features must match flattened conv output"

    # Batch tile (lane axis): multiple of 128, or the whole batch if smaller.
    # For N > 128 use >= 2 grid steps so v7x's two TensorCores both get work;
    # cap the tile so live activation slabs stay comfortably in vregs/VMEM.
    if batch_block is not None:
        NB = batch_block
    elif N <= 128:
        NB = N
    else:
        NB = min(1024, _round_up(pl.cdiv(N, 2), 128))
    grid = (pl.cdiv(N, NB),)

    # Wrapper-side layout plumbing (free): batch on lanes + conv1 zero pad.
    xp = jnp.pad(x[:, 0, :].astype(jnp.float32).T, ((1, 1), (0, 0)))   # (W+2, N)
    w1s = w1[:, 0, :].astype(jnp.float32)                              # (F, K)
    b1s = b1.astype(jnp.float32)                                       # (F,)
    w2s = w2.reshape(F, F * K).astype(jnp.float32)                     # (F, F*K)
    b2s = b2.astype(jnp.float32)                                       # (F,)
    wfcs = wfc.astype(jnp.float32)                                     # (p_w, F*L4)
    bfcs = bfc.astype(jnp.float32)                                     # (p_w,)

    kernel = functools.partial(_dapredictor_kernel, F=F, K=K, p=p, p_w=p_w,
                               L1=L1, L2=L2, L3=L3, L4=L4)
    smem = pl.BlockSpec(memory_space=pltpu.MemorySpace.SMEM)

    out_t = pl.pallas_call(
        kernel,
        out_shape=jax.ShapeDtypeStruct((p_w, N), jnp.float32),
        grid=grid,
        in_specs=[
            pl.BlockSpec((W + 2, NB), lambda i: (0, i)),   # input, blocked over batch
            smem, smem, smem, smem, smem, smem,            # tiny weights / biases
        ],
        out_specs=pl.BlockSpec((p_w, NB), lambda i: (0, i)),
        compiler_params=pltpu.CompilerParams(
            dimension_semantics=("parallel",)),
    )(xp, w1s, b1s, w2s, b2s, wfcs, bfcs)
    return out_t.T                                         # (N, p_w) torch convention


def _reference_numpy(x, w1, b1, w2, b2, wfc, bfc, p):
    x, w1, b1, w2, b2, wfc, bfc = map(np.asarray, (x, w1, b1, w2, b2, wfc, bfc))

    def conv1d_pad1(xx, w, b):
        n_, c_, l_ = xx.shape
        o_, _, k_ = w.shape
        xp_ = np.pad(xx, ((0, 0), (0, 0), (1, 1)))
        lo = l_ + 2 - k_ + 1
        out = np.zeros((n_, o_, lo), np.float32)
        for n in range(n_):
            for o in range(o_):
                for l in range(lo):
                    out[n, o, l] = np.sum(xp_[n, :, l:l + k_] * w[o]) + b[o]
        return out

    def pool(xx, pp):
        n_, c_, l_ = xx.shape
        lo = l_ // pp
        return xx[:, :, :lo * pp].reshape(n_, c_, lo, pp).max(-1)

    h = pool(np.maximum(conv1d_pad1(x, w1, b1), 0.0), p)
    h = pool(np.maximum(conv1d_pad1(h, w2, b2), 0.0), p)
    h = h.reshape(h.shape[0], -1)
    return np.maximum(h @ wfc.T + bfc, 0.0)


if __name__ == "__main__":
    # Hyper-params chosen so fc in_features = w - 2*(p-1) matches the
    # flattened conv output (as DAPredictor requires): 4 * 3 == 14 - 2 == 12.
    nb_filters, kernel_size_conv, kernel_size_pool, w, p_w = 4, 3, 2, 14, 4
    fc_in = w - 2 * (kernel_size_pool - 1)

    key = jax.random.PRNGKey(0)
    ks = jax.random.split(key, 8)
    w1 = jax.random.normal(ks[0], (nb_filters, 1, kernel_size_conv), jnp.float32) * 0.4
    b1 = jax.random.normal(ks[1], (nb_filters,), jnp.float32) * 0.1
    w2 = jax.random.normal(ks[2], (nb_filters, nb_filters, kernel_size_conv), jnp.float32) * 0.2
    b2 = jax.random.normal(ks[3], (nb_filters,), jnp.float32) * 0.1
    wfc = jax.random.normal(ks[4], (p_w, fc_in), jnp.float32) * 0.2
    bfc = jax.random.normal(ks[5], (p_w,), jnp.float32) * 0.1

    # Batch 2: the module's tiny case (single block covering the full batch).
    # Batch 256: exercises NB=128 lane-dense tiles and 2 "parallel" grid steps.
    for idx, nb_ts in enumerate((2, 256)):
        x = jax.random.normal(ks[6 + idx], (nb_ts, 1, w), jnp.float32)  # (N, 1, W)
        out = dapredictor_forward(x, w1, b1, w2, b2, wfc, bfc,
                                  kernel_size_pool=kernel_size_pool)
        out = jax.block_until_ready(out)
        ref = _reference_numpy(x, w1, b1, w2, b2, wfc, bfc, kernel_size_pool)
        assert out.shape == (nb_ts, p_w)
        # Pure-VPU f32 FMAs (no MXU): tight tolerance.
        np.testing.assert_allclose(np.asarray(out), ref, rtol=1e-4, atol=1e-4)

    print("KERNEL_OK")
</pallas_src>

<mosaic_0001>
module attributes {stable_mosaic.version = 11 : i64} {
  func.func @_dapredictor_kernel(%arg0: i32, %arg1: memref<16x2xf32, #tpu.memory_space<vmem>>, %arg2: memref<4x3xf32, #tpu.memory_space<smem>>, %arg3: memref<4xf32, #tpu.memory_space<smem>>, %arg4: memref<4x12xf32, #tpu.memory_space<smem>>, %arg5: memref<4xf32, #tpu.memory_space<smem>>, %arg6: memref<4x12xf32, #tpu.memory_space<smem>>, %arg7: memref<4xf32, #tpu.memory_space<smem>>, %arg8: memref<4x2xf32, #tpu.memory_space<vmem>>) attributes {dimension_semantics = [#tpu.dimension_semantics<parallel>], iteration_bounds = array<i64: 1>, scalar_prefetch = 0 : i64, scratch_operands = 0 : i64, tpu.core_type = #tpu.core_type<tc>, window_params = [{transform_indices = @transform_0, window_bounds = array<i64: 16, 2>}, {transform_indices = @transform_1, window_bounds = array<i64: 4, 3>}, {transform_indices = @transform_2, window_bounds = array<i64: 4>}, {transform_indices = @transform_3, window_bounds = array<i64: 4, 12>}, {transform_indices = @transform_4, window_bounds = array<i64: 4>}, {transform_indices = @transform_5, window_bounds = array<i64: 4, 12>}, {transform_indices = @transform_6, window_bounds = array<i64: 4>}, {transform_indices = @transform_7, window_bounds = array<i64: 4, 2>}]} {
    %c0 = arith.constant 0 : index
    %c0_0 = arith.constant 0 : index
    %0 = vector.load %arg1[%c0, %c0_0] : memref<16x2xf32, #tpu.memory_space<vmem>>, vector<16x2xf32>
    %cst = arith.constant 0.000000e+00 : f32
    %1 = vector.broadcast %cst : f32 to vector<1x2xf32>
    %2 = vector.extract_strided_slice %0 {offsets = [0, 0], sizes = [14, 2], strides = [1, 1]} : vector<16x2xf32> to vector<14x2xf32>
    %c0_1 = arith.constant 0 : index
    %c0_2 = arith.constant 0 : index
    %3 = memref.load %arg2[%c0_1, %c0_2] : memref<4x3xf32, #tpu.memory_space<smem>>
    %4 = vector.broadcast %3 : f32 to vector<14x2xf32>
    %5 = arith.mulf %2, %4 : vector<14x2xf32>
    %6 = vector.extract_strided_slice %0 {offsets = [1, 0], sizes = [14, 2], strides = [1, 1]} : vector<16x2xf32> to vector<14x2xf32>
    %c0_3 = arith.constant 0 : index
    %c1 = arith.constant 1 : index
    %7 = memref.load %arg2[%c0_3, %c1] : memref<4x3xf32, #tpu.memory_space<smem>>
    %8 = vector.broadcast %7 : f32 to vector<14x2xf32>
    %9 = arith.mulf %6, %8 : vector<14x2xf32>
    %10 = arith.addf %5, %9 : vector<14x2xf32>
    %11 = vector.extract_strided_slice %0 {offsets = [2, 0], sizes = [14, 2], strides = [1, 1]} : vector<16x2xf32> to vector<14x2xf32>
    %c0_4 = arith.constant 0 : index
    %c2 = arith.constant 2 : index
    %12 = memref.load %arg2[%c0_4, %c2] : memref<4x3xf32, #tpu.memory_space<smem>>
    %13 = vector.broadcast %12 : f32 to vector<14x2xf32>
    %14 = arith.mulf %11, %13 : vector<14x2xf32>
    %15 = arith.addf %10, %14 : vector<14x2xf32>
    %c0_5 = arith.constant 0 : index
    %16 = memref.load %arg3[%c0_5] : memref<4xf32, #tpu.memory_space<smem>>
    %17 = vector.broadcast %16 : f32 to vector<14x2xf32>
    %18 = arith.addf %15, %17 : vector<14x2xf32>
    %cst_6 = arith.constant 0.000000e+00 : f32
    %19 = vector.broadcast %cst_6 : f32 to vector<14x2xf32>
    %20 = arith.maximumf %18, %19 : vector<14x2xf32>
    %21 = vector.extract_strided_slice %20 {offsets = [0, 0], sizes = [1, 2], strides = [1, 1]} : vector<14x2xf32> to vector<1x2xf32>
    %22 = vector.extract_strided_slice %20 {offsets = [1, 0], sizes = [1, 2], strides = [1, 1]} : vector<14x2xf32> to vector<1x2xf32>
    %23 = arith.maximumf %21, %22 : vector<1x2xf32>
    %24 = vector.extract_strided_slice %20 {offsets = [2, 0], sizes = [1, 2], strides = [1, 1]} : vector<14x2xf32> to vector<1x2xf32>
    %25 = vector.extract_strided_slice %20 {offsets = [3, 0], sizes = [1, 2], strides = [1, 1]} : vector<14x2xf32> to vector<1x2xf32>
    %26 = arith.maximumf %24, %25 : vector<1x2xf32>
    %27 = vector.extract_strided_slice %20 {offsets = [4, 0], sizes = [1, 2], strides = [1, 1]} : vector<14x2xf32> to vector<1x2xf32>
    %28 = vector.extract_strided_slice %20 {offsets = [5, 0], sizes = [1, 2], strides = [1, 1]} : vector<14x2xf32> to vector<1x2xf32>
    %29 = arith.maximumf %27, %28 : vector<1x2xf32>
    %30 = vector.extract_strided_slice %20 {offsets = [6, 0], sizes = [1, 2], strides = [1, 1]} : vector<14x2xf32> to vector<1x2xf32>
    %31 = vector.extract_strided_slice %20 {offsets = [7, 0], sizes = [1, 2], strides = [1, 1]} : vector<14x2xf32> to vector<1x2xf32>
    %32 = arith.maximumf %30, %31 : vector<1x2xf32>
    %33 = vector.extract_strided_slice %20 {offsets = [8, 0], sizes = [1, 2], strides = [1, 1]} : vector<14x2xf32> to vector<1x2xf32>
    %34 = vector.extract_strided_slice %20 {offsets = [9, 0], sizes = [1, 2], strides = [1, 1]} : vector<14x2xf32> to vector<1x2xf32>
    %35 = arith.maximumf %33, %34 : vector<1x2xf32>
    %36 = vector.extract_strided_slice %20 {offsets = [10, 0], sizes = [1, 2], strides = [1, 1]} : vector<14x2xf32> to vector<1x2xf32>
    %37 = vector.extract_strided_slice %20 {offsets = [11, 0], sizes = [1, 2], strides = [1, 1]} : vector<14x2xf32> to vector<1x2xf32>
    %38 = arith.maximumf %36, %37 : vector<1x2xf32>
    %39 = vector.extract_strided_slice %20 {offsets = [12, 0], sizes = [1, 2], strides = [1, 1]} : vector<14x2xf32> to vector<1x2xf32>
    %40 = vector.extract_strided_slice %20 {offsets = [13, 0], sizes = [1, 2], strides = [1, 1]} : vector<14x2xf32> to vector<1x2xf32>
    %41 = arith.maximumf %39, %40 : vector<1x2xf32>
    %42 = tpu.concatenate %1, %23, %26, %29, %32, %35, %38, %41, %1 in 0 : vector<1x2xf32>, vector<1x2xf32>, vector<1x2xf32>, vector<1x2xf32>, vector<1x2xf32>, vector<1x2xf32>, vector<1x2xf32>, vector<1x2xf32>, vector<1x2xf32> -> vector<9x2xf32>
    %43 = vector.extract_strided_slice %0 {offsets = [0, 0], sizes = [14, 2], strides = [1, 1]} : vector<16x2xf32> to vector<14x2xf32>
    %c1_7 = arith.constant 1 : index
    %c0_8 = arith.constant 0 : index
    %44 = memref.load %arg2[%c1_7, %c0_8] : memref<4x3xf32, #tpu.memory_space<smem>>
    %45 = vector.broadcast %44 : f32 to vector<14x2xf32>
    %46 = arith.mulf %43, %45 : vector<14x2xf32>
    %47 = vector.extract_strided_slice %0 {offsets = [1, 0], sizes = [14, 2], strides = [1, 1]} : vector<16x2xf32> to vector<14x2xf32>
    %c1_9 = arith.constant 1 : index
    %c1_10 = arith.constant 1 : index
    %48 = memref.load %arg2[%c1_9, %c1_10] : memref<4x3xf32, #tpu.memory_space<smem>>
    %49 = vector.broadcast %48 : f32 to vector<14x2xf32>
    %50 = arith.mulf %47, %49 : vector<14x2xf32>
    %51 = arith.addf %46, %50 : vector<14x2xf32>
    %52 = vector.extract_strided_slice %0 {offsets = [2, 0], sizes = [14, 2], strides = [1, 1]} : vector<16x2xf32> to vector<14x2xf32>
    %c1_11 = arith.constant 1 : index
    %c2_12 = arith.constant 2 : index
    %53 = memref.load %arg2[%c1_11, %c2_12] : memref<4x3xf32, #tpu.memory_space<smem>>
    %54 = vector.broadcast %53 : f32 to vector<14x2xf32>
    %55 = arith.mulf %52, %54 : vector<14x2xf32>
    %56 = arith.addf %51, %55 : vector<14x2xf32>
    %c1_13 = arith.constant 1 : index
    %57 = memref.load %arg3[%c1_13] : memref<4xf32, #tpu.memory_space<smem>>
    %58 = vector.broadcast %57 : f32 to vector<14x2xf32>
    %59 = arith.addf %56, %58 : vector<14x2xf32>
    %cst_14 = arith.constant 0.000000e+00 : f32
    %60 = vector.broadcast %cst_14 : f32 to vector<14x2xf32>
    %61 = arith.maximumf %59, %60 : vector<14x2xf32>
    %62 = vector.extract_strided_slice %61 {offsets = [0, 0], sizes = [1, 2], strides = [1, 1]} : vector<14x2xf32> to vector<1x2xf32>
    %63 = vector.extract_strided_slice %61 {offsets = [1, 0], sizes = [1, 2], strides = [1, 1]} : vector<14x2xf32> to vector<1x2xf32>
    %64 = arith.maximumf %62, %63 : vector<1x2xf32>
    %65 = vector.extract_strided_slice %61 {offsets = [2, 0], sizes = [1, 2], strides = [1, 1]} : vector<14x2xf32> to vector<1x2xf32>
    %66 = vector.extract_strided_slice %61 {offsets = [3, 0], sizes = [1, 2], strides = [1, 1]} : vector<14x2xf32> to vector<1x2xf32>
    %67 = arith.maximumf %65, %66 : vector<1x2xf32>
    %68 = vector.extract_strided_slice %61 {offsets = [4, 0], sizes = [1, 2], strides = [1, 1]} : vector<14x2xf32> to vector<1x2xf32>
    %69 = vector.extract_strided_slice %61 {offsets = [5, 0], sizes = [1, 2], strides = [1, 1]} : vector<14x2xf32> to vector<1x2xf32>
    %70 = arith.maximumf %68, %69 : vector<1x2xf32>
    %71 = vector.extract_strided_slice %61 {offsets = [6, 0], sizes = [1, 2], strides = [1, 1]} : vector<14x2xf32> to vector<1x2xf32>
    %72 = vector.extract_strided_slice %61 {offsets = [7, 0], sizes = [1, 2], strides = [1, 1]} : vector<14x2xf32> to vector<1x2xf32>
    %73 = arith.maximumf %71, %72 : vector<1x2xf32>
    %74 = vector.extract_strided_slice %61 {offsets = [8, 0], sizes = [1, 2], strides = [1, 1]} : vector<14x2xf32> to vector<1x2xf32>
    %75 = vector.extract_strided_slice %61 {offsets = [9, 0], sizes = [1, 2], strides = [1, 1]} : vector<14x2xf32> to vector<1x2xf32>
    %76 = arith.maximumf %74, %75 : vector<1x2xf32>
    %77 = vector.extract_strided_slice %61 {offsets = [10, 0], sizes = [1, 2], strides = [1, 1]} : vector<14x2xf32> to vector<1x2xf32>
    %78 = vector.extract_strided_slice %61 {offsets = [11, 0], sizes = [1, 2], strides = [1, 1]} : vector<14x2xf32> to vector<1x2xf32>
    %79 = arith.maximumf %77, %78 : vector<1x2xf32>
    %80 = vector.extract_strided_slice %61 {offsets = [12, 0], sizes = [1, 2], strides = [1, 1]} : vector<14x2xf32> to vector<1x2xf32>
    %81 = vector.extract_strided_slice %61 {offsets = [13, 0], sizes = [1, 2], strides = [1, 1]} : vector<14x2xf32> to vector<1x2xf32>
    %82 = arith.maximumf %80, %81 : vector<1x2xf32>
    %83 = tpu.concatenate %1, %64, %67, %70, %73, %76, %79, %82, %1 in 0 : vector<1x2xf32>, vector<1x2xf32>, vector<1x2xf32>, vector<1x2xf32>, vector<1x2xf32>, vector<1x2xf32>, vector<1x2xf32>, vector<1x2xf32>, vector<1x2xf32> -> vector<9x2xf32>
    %84 = vector.extract_strided_slice %0 {offsets = [0, 0], sizes = [14, 2], strides = [1, 1]} : vector<16x2xf32> to vector<14x2xf32>
    %c2_15 = arith.constant 2 : index
    %c0_16 = arith.constant 0 : index
    %85 = memref.load %arg2[%c2_15, %c0_16] : memref<4x3xf32, #tpu.memory_space<smem>>
    %86 = vector.broadcast %85 : f32 to vector<14x2xf32>
    %87 = arith.mulf %84, %86 : vector<14x2xf32>
    %88 = vector.extract_strided_slice %0 {offsets = [1, 0], sizes = [14, 2], strides = [1, 1]} : vector<16x2xf32> to vector<14x2xf32>
    %c2_17 = arith.constant 2 : index
    %c1_18 = arith.constant 1 : index
    %89 = memref.load %arg2[%c2_17, %c1_18] : memref<4x3xf32, #tpu.memory_space<smem>>
    %90 = vector.broadcast %89 : f32 to vector<14x2xf32>
    %91 = arith.mulf %88, %90 : vector<14x2xf32>
    %92 = arith.addf %87, %91 : vector<14x2xf32>
    %93 = vector.extract_strided_slice %0 {offsets = [2, 0], sizes = [14, 2], strides = [1, 1]} : vector<16x2xf32> to vector<14x2xf32>
    %c2_19 = arith.constant 2 : index
    %c2_20 = arith.constant 2 : index
    %94 = memref.load %arg2[%c2_19, %c2_20] : memref<4x3xf32, #tpu.memory_space<smem>>
    %95 = vector.broadcast %94 : f32 to vector<14x2xf32>
    %96 = arith.mulf %93, %95 : vector<14x2xf32>
    %97 = arith.addf %92, %96 : vector<14x2xf32>
    %c2_21 = arith.constant 2 : index
    %98 = memref.load %arg3[%c2_21] : memref<4xf32, #tpu.memory_space<smem>>
    %99 = vector.broadcast %98 : f32 to vector<14x2xf32>
    %100 = arith.addf %97, %99 : vector<14x2xf32>
    %cst_22 = arith.constant 0.000000e+00 : f32
    %101 = vector.broadcast %cst_22 : f32 to vector<14x2xf32>
    %102 = arith.maximumf %100, %101 : vector<14x2xf32>
    %103 = vector.extract_strided_slice %102 {offsets = [0, 0], sizes = [1, 2], strides = [1, 1]} : vector<14x2xf32> to vector<1x2xf32>
    %104 = vector.extract_strided_slice %102 {offsets = [1, 0], sizes = [1, 2], strides = [1, 1]} : vector<14x2xf32> to vector<1x2xf32>
    %105 = arith.maximumf %103, %104 : vector<1x2xf32>
    %106 = vector.extract_strided_slice %102 {offsets = [2, 0], sizes = [1, 2], strides = [1, 1]} : vector<14x2xf32> to vector<1x2xf32>
    %107 = vector.extract_strided_slice %102 {offsets = [3, 0], sizes = [1, 2], strides = [1, 1]} : vector<14x2xf32> to vector<1x2xf32>
    %108 = arith.maximumf %106, %107 : vector<1x2xf32>
    %109 = vector.extract_strided_slice %102 {offsets = [4, 0], sizes = [1, 2], strides = [1, 1]} : vector<14x2xf32> to vector<1x2xf32>
    %110 = vector.extract_strided_slice %102 {offsets = [5, 0], sizes = [1, 2], strides = [1, 1]} : vector<14x2xf32> to vector<1x2xf32>
    %111 = arith.maximumf %109, %110 : vector<1x2xf32>
    %112 = vector.extract_strided_slice %102 {offsets = [6, 0], sizes = [1, 2], strides = [1, 1]} : vector<14x2xf32> to vector<1x2xf32>
    %113 = vector.extract_strided_slice %102 {offsets = [7, 0], sizes = [1, 2], strides = [1, 1]} : vector<14x2xf32> to vector<1x2xf32>
    %114 = arith.maximumf %112, %113 : vector<1x2xf32>
    %115 = vector.extract_strided_slice %102 {offsets = [8, 0], sizes = [1, 2], strides = [1, 1]} : vector<14x2xf32> to vector<1x2xf32>
    %116 = vector.extract_strided_slice %102 {offsets = [9, 0], sizes = [1, 2], strides = [1, 1]} : vector<14x2xf32> to vector<1x2xf32>
    %117 = arith.maximumf %115, %116 : vector<1x2xf32>
    %118 = vector.extract_strided_slice %102 {offsets = [10, 0], sizes = [1, 2], strides = [1, 1]} : vector<14x2xf32> to vector<1x2xf32>
    %119 = vector.extract_strided_slice %102 {offsets = [11, 0], sizes = [1, 2], strides = [1, 1]} : vector<14x2xf32> to vector<1x2xf32>
    %120 = arith.maximumf %118, %119 : vector<1x2xf32>
    %121 = vector.extract_strided_slice %102 {offsets = [12, 0], sizes = [1, 2], strides = [1, 1]} : vector<14x2xf32> to vector<1x2xf32>
    %122 = vector.extract_strided_slice %102 {offsets = [13, 0], sizes = [1, 2], strides = [1, 1]} : vector<14x2xf32> to vector<1x2xf32>
    %123 = arith.maximumf %121, %122 : vector<1x2xf32>
    %124 = tpu.concatenate %1, %105, %108, %111, %114, %117, %120, %123, %1 in 0 : vector<1x2xf32>, vector<1x2xf32>, vector<1x2xf32>, vector<1x2xf32>, vector<1x2xf32>, vector<1x2xf32>, vector<1x2xf32>, vector<1x2xf32>, vector<1x2xf32> -> vector<9x2xf32>
    %125 = vector.extract_strided_slice %0 {offsets = [0, 0], sizes = [14, 2], strides = [1, 1]} : vector<16x2xf32> to vector<14x2xf32>
    %c3 = arith.constant 3 : index
    %c0_23 = arith.constant 0 : index
    %126 = memref.load %arg2[%c3, %c0_23] : memref<4x3xf32, #tpu.memory_space<smem>>
    %127 = vector.broadcast %126 : f32 to vector<14x2xf32>
    %128 = arith.mulf %125, %127 : vector<14x2xf32>
    %129 = vector.extract_strided_slice %0 {offsets = [1, 0], sizes = [14, 2], strides = [1, 1]} : vector<16x2xf32> to vector<14x2xf32>
    %c3_24 = arith.constant 3 : index
    %c1_25 = arith.constant 1 : index
    %130 = memref.load %arg2[%c3_24, %c1_25] : memref<4x3xf32, #tpu.memory_space<smem>>
    %131 = vector.broadcast %130 : f32 to vector<14x2xf32>
    %132 = arith.mulf %129, %131 : vector<14x2xf32>
    %133 = arith.addf %128, %132 : vector<14x2xf32>
    %134 = vector.extract_strided_slice %0 {offsets = [2, 0], sizes = [14, 2], strides = [1, 1]} : vector<16x2xf32> to vector<14x2xf32>
    %c3_26 = arith.constant 3 : index
    %c2_27 = arith.constant 2 : index
    %135 = memref.load %arg2[%c3_26, %c2_27] : memref<4x3xf32, #tpu.memory_space<smem>>
    %136 = vector.broadcast %135 : f32 to vector<14x2xf32>
    %137 = arith.mulf %134, %136 : vector<14x2xf32>
    %138 = arith.addf %133, %137 : vector<14x2xf32>
    %c3_28 = arith.constant 3 : index
    %139 = memref.load %arg3[%c3_28] : memref<4xf32, #tpu.memory_space<smem>>
    %140 = vector.broadcast %139 : f32 to vector<14x2xf32>
    %141 = arith.addf %138, %140 : vector<14x2xf32>
    %cst_29 = arith.constant 0.000000e+00 : f32
    %142 = vector.broadcast %cst_29 : f32 to vector<14x2xf32>
    %143 = arith.maximumf %141, %142 : vector<14x2xf32>
    %144 = vector.extract_strided_slice %143 {offsets = [0, 0], sizes = [1, 2], strides = [1, 1]} : vector<14x2xf32> to vector<1x2xf32>
    %145 = vector.extract_strided_slice %143 {offsets = [1, 0], sizes = [1, 2], strides = [1, 1]} : vector<14x2xf32> to vector<1x2xf32>
    %146 = arith.maximumf %144, %145 : vector<1x2xf32>
    %147 = vector.extract_strided_slice %143 {offsets = [2, 0], sizes = [1, 2], strides = [1, 1]} : vector<14x2xf32> to vector<1x2xf32>
    %148 = vector.extract_strided_slice %143 {offsets = [3, 0], sizes = [1, 2], strides = [1, 1]} : vector<14x2xf32> to vector<1x2xf32>
    %149 = arith.maximumf %147, %148 : vector<1x2xf32>
    %150 = vector.extract_strided_slice %143 {offsets = [4, 0], sizes = [1, 2], strides = [1, 1]} : vector<14x2xf32> to vector<1x2xf32>
    %151 = vector.extract_strided_slice %143 {offsets = [5, 0], sizes = [1, 2], strides = [1, 1]} : vector<14x2xf32> to vector<1x2xf32>
    %152 = arith.maximumf %150, %151 : vector<1x2xf32>
    %153 = vector.extract_strided_slice %143 {offsets = [6, 0], sizes = [1, 2], strides = [1, 1]} : vector<14x2xf32> to vector<1x2xf32>
    %154 = vector.extract_strided_slice %143 {offsets = [7, 0], sizes = [1, 2], strides = [1, 1]} : vector<14x2xf32> to vector<1x2xf32>
    %155 = arith.maximumf %153, %154 : vector<1x2xf32>
    %156 = vector.extract_strided_slice %143 {offsets = [8, 0], sizes = [1, 2], strides = [1, 1]} : vector<14x2xf32> to vector<1x2xf32>
    %157 = vector.extract_strided_slice %143 {offsets = [9, 0], sizes = [1, 2], strides = [1, 1]} : vector<14x2xf32> to vector<1x2xf32>
    %158 = arith.maximumf %156, %157 : vector<1x2xf32>
    %159 = vector.extract_strided_slice %143 {offsets = [10, 0], sizes = [1, 2], strides = [1, 1]} : vector<14x2xf32> to vector<1x2xf32>
    %160 = vector.extract_strided_slice %143 {offsets = [11, 0], sizes = [1, 2], strides = [1, 1]} : vector<14x2xf32> to vector<1x2xf32>
    %161 = arith.maximumf %159, %160 : vector<1x2xf32>
    %162 = vector.extract_strided_slice %143 {offsets = [12, 0], sizes = [1, 2], strides = [1, 1]} : vector<14x2xf32> to vector<1x2xf32>
    %163 = vector.extract_strided_slice %143 {offsets = [13, 0], sizes = [1, 2], strides = [1, 1]} : vector<14x2xf32> to vector<1x2xf32>
    %164 = arith.maximumf %162, %163 : vector<1x2xf32>
    %165 = tpu.concatenate %1, %146, %149, %152, %155, %158, %161, %164, %1 in 0 : vector<1x2xf32>, vector<1x2xf32>, vector<1x2xf32>, vector<1x2xf32>, vector<1x2xf32>, vector<1x2xf32>, vector<1x2xf32>, vector<1x2xf32>, vector<1x2xf32> -> vector<9x2xf32>
    %166 = vector.extract_strided_slice %42 {offsets = [0, 0], sizes = [7, 2], strides = [1, 1]} : vector<9x2xf32> to vector<7x2xf32>
    %c0_30 = arith.constant 0 : index
    %c0_31 = arith.constant 0 : index
    %167 = memref.load %arg4[%c0_30, %c0_31] : memref<4x12xf32, #tpu.memory_space<smem>>
    %168 = vector.broadcast %167 : f32 to vector<7x2xf32>
    %169 = arith.mulf %166, %168 : vector<7x2xf32>
    %170 = vector.extract_strided_slice %42 {offsets = [1, 0], sizes = [7, 2], strides = [1, 1]} : vector<9x2xf32> to vector<7x2xf32>
    %c0_32 = arith.constant 0 : index
    %c1_33 = arith.constant 1 : index
    %171 = memref.load %arg4[%c0_32, %c1_33] : memref<4x12xf32, #tpu.memory_space<smem>>
    %172 = vector.broadcast %171 : f32 to vector<7x2xf32>
    %173 = arith.mulf %170, %172 : vector<7x2xf32>
    %174 = arith.addf %169, %173 : vector<7x2xf32>
    %175 = vector.extract_strided_slice %42 {offsets = [2, 0], sizes = [7, 2], strides = [1, 1]} : vector<9x2xf32> to vector<7x2xf32>
    %c0_34 = arith.constant 0 : index
    %c2_35 = arith.constant 2 : index
    %176 = memref.load %arg4[%c0_34, %c2_35] : memref<4x12xf32, #tpu.memory_space<smem>>
    %177 = vector.broadcast %176 : f32 to vector<7x2xf32>
    %178 = arith.mulf %175, %177 : vector<7x2xf32>
    %179 = arith.addf %174, %178 : vector<7x2xf32>
    %180 = vector.extract_strided_slice %83 {offsets = [0, 0], sizes = [7, 2], strides = [1, 1]} : vector<9x2xf32> to vector<7x2xf32>
    %c0_36 = arith.constant 0 : index
    %c3_37 = arith.constant 3 : index
    %181 = memref.load %arg4[%c0_36, %c3_37] : memref<4x12xf32, #tpu.memory_space<smem>>
    %182 = vector.broadcast %181 : f32 to vector<7x2xf32>
    %183 = arith.mulf %180, %182 : vector<7x2xf32>
    %184 = arith.addf %179, %183 : vector<7x2xf32>
    %185 = vector.extract_strided_slice %83 {offsets = [1, 0], sizes = [7, 2], strides = [1, 1]} : vector<9x2xf32> to vector<7x2xf32>
    %c0_38 = arith.constant 0 : index
    %c4 = arith.constant 4 : index
    %186 = memref.load %arg4[%c0_38, %c4] : memref<4x12xf32, #tpu.memory_space<smem>>
    %187 = vector.broadcast %186 : f32 to vector<7x2xf32>
    %188 = arith.mulf %185, %187 : vector<7x2xf32>
    %189 = arith.addf %184, %188 : vector<7x2xf32>
    %190 = vector.extract_strided_slice %83 {offsets = [2, 0], sizes = [7, 2], strides = [1, 1]} : vector<9x2xf32> to vector<7x2xf32>
    %c0_39 = arith.constant 0 : index
    %c5 = arith.constant 5 : index
    %191 = memref.load %arg4[%c0_39, %c5] : memref<4x12xf32, #tpu.memory_space<smem>>
    %192 = vector.broadcast %191 : f32 to vector<7x2xf32>
    %193 = arith.mulf %190, %192 : vector<7x2xf32>
    %194 = arith.addf %189, %193 : vector<7x2xf32>
    %195 = vector.extract_strided_slice %124 {offsets = [0, 0], sizes = [7, 2], strides = [1, 1]} : vector<9x2xf32> to vector<7x2xf32>
    %c0_40 = arith.constant 0 : index
    %c6 = arith.constant 6 : index
    %196 = memref.load %arg4[%c0_40, %c6] : memref<4x12xf32, #tpu.memory_space<smem>>
    %197 = vector.broadcast %196 : f32 to vector<7x2xf32>
    %198 = arith.mulf %195, %197 : vector<7x2xf32>
    %199 = arith.addf %194, %198 : vector<7x2xf32>
    %200 = vector.extract_strided_slice %124 {offsets = [1, 0], sizes = [7, 2], strides = [1, 1]} : vector<9x2xf32> to vector<7x2xf32>
    %c0_41 = arith.constant 0 : index
    %c7 = arith.constant 7 : index
    %201 = memref.load %arg4[%c0_41, %c7] : memref<4x12xf32, #tpu.memory_space<smem>>
    %202 = vector.broadcast %201 : f32 to vector<7x2xf32>
    %203 = arith.mulf %200, %202 : vector<7x2xf32>
    %204 = arith.addf %199, %203 : vector<7x2xf32>
    %205 = vector.extract_strided_slice %124 {offsets = [2, 0], sizes = [7, 2], strides = [1, 1]} : vector<9x2xf32> to vector<7x2xf32>
    %c0_42 = arith.constant 0 : index
    %c8 = arith.constant 8 : index
    %206 = memref.load %arg4[%c0_42, %c8] : memref<4x12xf32, #tpu.memory_space<smem>>
    %207 = vector.broadcast %206 : f32 to vector<7x2xf32>
    %208 = arith.mulf %205, %207 : vector<7x2xf32>
    %209 = arith.addf %204, %208 : vector<7x2xf32>
    %210 = vector.extract_strided_slice %165 {offsets = [0, 0], sizes = [7, 2], strides = [1, 1]} : vector<9x2xf32> to vector<7x2xf32>
    %c0_43 = arith.constant 0 : index
    %c9 = arith.constant 9 : index
    %211 = memref.load %arg4[%c0_43, %c9] : memref<4x12xf32, #tpu.memory_space<smem>>
    %212 = vector.broadcast %211 : f32 to vector<7x2xf32>
    %213 = arith.mulf %210, %212 : vector<7x2xf32>
    %214 = arith.addf %209, %213 : vector<7x2xf32>
    %215 = vector.extract_strided_slice %165 {offsets = [1, 0], sizes = [7, 2], strides = [1, 1]} : vector<9x2xf32> to vector<7x2xf32>
    %c0_44 = arith.constant 0 : index
    %c10 = arith.constant 10 : index
    %216 = memref.load %arg4[%c0_44, %c10] : memref<4x12xf32, #tpu.memory_space<smem>>
    %217 = vector.broadcast %216 : f32 to vector<7x2xf32>
    %218 = arith.mulf %215, %217 : vector<7x2xf32>
    %219 = arith.addf %214, %218 : vector<7x2xf32>
    %220 = vector.extract_strided_slice %165 {offsets = [2, 0], sizes = [7, 2], strides = [1, 1]} : vector<9x2xf32> to vector<7x2xf32>
    %c0_45 = arith.constant 0 : index
    %c11 = arith.constant 11 : index
    %221 = memref.load %arg4[%c0_45, %c11] : memref<4x12xf32, #tpu.memory_space<smem>>
    %222 = vector.broadcast %221 : f32 to vector<7x2xf32>
    %223 = arith.mulf %220, %222 : vector<7x2xf32>
    %224 = arith.addf %219, %223 : vector<7x2xf32>
    %c0_46 = arith.constant 0 : index
    %225 = memref.load %arg5[%c0_46] : memref<4xf32, #tpu.memory_space<smem>>
    %226 = vector.broadcast %225 : f32 to vector<7x2xf32>
    %227 = arith.addf %224, %226 : vector<7x2xf32>
    %cst_47 = arith.constant 0.000000e+00 : f32
    %228 = vector.broadcast %cst_47 : f32 to vector<7x2xf32>
    %229 = arith.maximumf %227, %228 : vector<7x2xf32>
    %230 = vector.extract_strided_slice %229 {offsets = [0, 0], sizes = [1, 2], strides = [1, 1]} : vector<7x2xf32> to vector<1x2xf32>
    %231 = vector.extract_strided_slice %229 {offsets = [1, 0], sizes = [1, 2], strides = [1, 1]} : vector<7x2xf32> to vector<1x2xf32>
    %232 = arith.maximumf %230, %231 : vector<1x2xf32>
    %233 = vector.extract_strided_slice %229 {offsets = [2, 0], sizes = [1, 2], strides = [1, 1]} : vector<7x2xf32> to vector<1x2xf32>
    %234 = vector.extract_strided_slice %229 {offsets = [3, 0], sizes = [1, 2], strides = [1, 1]} : vector<7x2xf32> to vector<1x2xf32>
    %235 = arith.maximumf %233, %234 : vector<1x2xf32>
    %236 = vector.extract_strided_slice %229 {offsets = [4, 0], sizes = [1, 2], strides = [1, 1]} : vector<7x2xf32> to vector<1x2xf32>
    %237 = vector.extract_strided_slice %229 {offsets = [5, 0], sizes = [1, 2], strides = [1, 1]} : vector<7x2xf32> to vector<1x2xf32>
    %238 = arith.maximumf %236, %237 : vector<1x2xf32>
    %239 = vector.extract_strided_slice %42 {offsets = [0, 0], sizes = [7, 2], strides = [1, 1]} : vector<9x2xf32> to vector<7x2xf32>
    %c1_48 = arith.constant 1 : index
    %c0_49 = arith.constant 0 : index
    %240 = memref.load %arg4[%c1_48, %c0_49] : memref<4x12xf32, #tpu.memory_space<smem>>
    %241 = vector.broadcast %240 : f32 to vector<7x2xf32>
    %242 = arith.mulf %239, %241 : vector<7x2xf32>
    %243 = vector.extract_strided_slice %42 {offsets = [1, 0], sizes = [7, 2], strides = [1, 1]} : vector<9x2xf32> to vector<7x2xf32>
    %c1_50 = arith.constant 1 : index
    %c1_51 = arith.constant 1 : index
    %244 = memref.load %arg4[%c1_50, %c1_51] : memref<4x12xf32, #tpu.memory_space<smem>>
    %245 = vector.broadcast %244 : f32 to vector<7x2xf32>
    %246 = arith.mulf %243, %245 : vector<7x2xf32>
    %247 = arith.addf %242, %246 : vector<7x2xf32>
    %248 = vector.extract_strided_slice %42 {offsets = [2, 0], sizes = [7, 2], strides = [1, 1]} : vector<9x2xf32> to vector<7x2xf32>
    %c1_52 = arith.constant 1 : index
    %c2_53 = arith.constant 2 : index
    %249 = memref.load %arg4[%c1_52, %c2_53] : memref<4x12xf32, #tpu.memory_space<smem>>
    %250 = vector.broadcast %249 : f32 to vector<7x2xf32>
    %251 = arith.mulf %248, %250 : vector<7x2xf32>
    %252 = arith.addf %247, %251 : vector<7x2xf32>
    %253 = vector.extract_strided_slice %83 {offsets = [0, 0], sizes = [7, 2], strides = [1, 1]} : vector<9x2xf32> to vector<7x2xf32>
    %c1_54 = arith.constant 1 : index
    %c3_55 = arith.constant 3 : index
    %254 = memref.load %arg4[%c1_54, %c3_55] : memref<4x12xf32, #tpu.memory_space<smem>>
    %255 = vector.broadcast %254 : f32 to vector<7x2xf32>
    %256 = arith.mulf %253, %255 : vector<7x2xf32>
    %257 = arith.addf %252, %256 : vector<7x2xf32>
    %258 = vector.extract_strided_slice %83 {offsets = [1, 0], sizes = [7, 2], strides = [1, 1]} : vector<9x2xf32> to vector<7x2xf32>
    %c1_56 = arith.constant 1 : index
    %c4_57 = arith.constant 4 : index
    %259 = memref.load %arg4[%c1_56, %c4_57] : memref<4x12xf32, #tpu.memory_space<smem>>
    %260 = vector.broadcast %259 : f32 to vector<7x2xf32>
    %261 = arith.mulf %258, %260 : vector<7x2xf32>
    %262 = arith.addf %257, %261 : vector<7x2xf32>
    %263 = vector.extract_strided_slice %83 {offsets = [2, 0], sizes = [7, 2], strides = [1, 1]} : vector<9x2xf32> to vector<7x2xf32>
    %c1_58 = arith.constant 1 : index
    %c5_59 = arith.constant 5 : index
    %264 = memref.load %arg4[%c1_58, %c5_59] : memref<4x12xf32, #tpu.memory_space<smem>>
    %265 = vector.broadcast %264 : f32 to vector<7x2xf32>
    %266 = arith.mulf %263, %265 : vector<7x2xf32>
    %267 = arith.addf %262, %266 : vector<7x2xf32>
    %268 = vector.extract_strided_slice %124 {offsets = [0, 0], sizes = [7, 2], strides = [1, 1]} : vector<9x2xf32> to vector<7x2xf32>
    %c1_60 = arith.constant 1 : index
    %c6_61 = arith.constant 6 : index
    %269 = memref.load %arg4[%c1_60, %c6_61] : memref<4x12xf32, #tpu.memory_space<smem>>
    %270 = vector.broadcast %269 : f32 to vector<7x2xf32>
    %271 = arith.mulf %268, %270 : vector<7x2xf32>
    %272 = arith.addf %267, %271 : vector<7x2xf32>
    %273 = vector.extract_strided_slice %124 {offsets = [1, 0], sizes = [7, 2], strides = [1, 1]} : vector<9x2xf32> to vector<7x2xf32>
    %c1_62 = arith.constant 1 : index
    %c7_63 = arith.constant 7 : index
    %274 = memref.load %arg4[%c1_62, %c7_63] : memref<4x12xf32, #tpu.memory_space<smem>>
    %275 = vector.broadcast %274 : f32 to vector<7x2xf32>
    %276 = arith.mulf %273, %275 : vector<7x2xf32>
    %277 = arith.addf %272, %276 : vector<7x2xf32>
    %278 = vector.extract_strided_slice %124 {offsets = [2, 0], sizes = [7, 2], strides = [1, 1]} : vector<9x2xf32> to vector<7x2xf32>
    %c1_64 = arith.constant 1 : index
    %c8_65 = arith.constant 8 : index
    %279 = memref.load %arg4[%c1_64, %c8_65] : memref<4x12xf32, #tpu.memory_space<smem>>
    %280 = vector.broadcast %279 : f32 to vector<7x2xf32>
    %281 = arith.mulf %278, %280 : vector<7x2xf32>
    %282 = arith.addf %277, %281 : vector<7x2xf32>
    %283 = vector.extract_strided_slice %165 {offsets = [0, 0], sizes = [7, 2], strides = [1, 1]} : vector<9x2xf32> to vector<7x2xf32>
    %c1_66 = arith.constant 1 : index
    %c9_67 = arith.constant 9 : index
    %284 = memref.load %arg4[%c1_66, %c9_67] : memref<4x12xf32, #tpu.memory_space<smem>>
    %285 = vector.broadcast %284 : f32 to vector<7x2xf32>
    %286 = arith.mulf %283, %285 : vector<7x2xf32>
    %287 = arith.addf %282, %286 : vector<7x2xf32>
    %288 = vector.extract_strided_slice %165 {offsets = [1, 0], sizes = [7, 2], strides = [1, 1]} : vector<9x2xf32> to vector<7x2xf32>
    %c1_68 = arith.constant 1 : index
    %c10_69 = arith.constant 10 : index
    %289 = memref.load %arg4[%c1_68, %c10_69] : memref<4x12xf32, #tpu.memory_space<smem>>
    %290 = vector.broadcast %289 : f32 to vector<7x2xf32>
    %291 = arith.mulf %288, %290 : vector<7x2xf32>
    %292 = arith.addf %287, %291 : vector<7x2xf32>
    %293 = vector.extract_strided_slice %165 {offsets = [2, 0], sizes = [7, 2], strides = [1, 1]} : vector<9x2xf32> to vector<7x2xf32>
    %c1_70 = arith.constant 1 : index
    %c11_71 = arith.constant 11 : index
    %294 = memref.load %arg4[%c1_70, %c11_71] : memref<4x12xf32, #tpu.memory_space<smem>>
    %295 = vector.broadcast %294 : f32 to vector<7x2xf32>
    %296 = arith.mulf %293, %295 : vector<7x2xf32>
    %297 = arith.addf %292, %296 : vector<7x2xf32>
    %c1_72 = arith.constant 1 : index
    %298 = memref.load %arg5[%c1_72] : memref<4xf32, #tpu.memory_space<smem>>
    %299 = vector.broadcast %298 : f32 to vector<7x2xf32>
    %300 = arith.addf %297, %299 : vector<7x2xf32>
    %cst_73 = arith.constant 0.000000e+00 : f32
    %301 = vector.broadcast %cst_73 : f32 to vector<7x2xf32>
    %302 = arith.maximumf %300, %301 : vector<7x2xf32>
    %303 = vector.extract_strided_slice %302 {offsets = [0, 0], sizes = [1, 2], strides = [1, 1]} : vector<7x2xf32> to vector<1x2xf32>
    %304 = vector.extract_strided_slice %302 {offsets = [1, 0], sizes = [1, 2], strides = [1, 1]} : vector<7x2xf32> to vector<1x2xf32>
    %305 = arith.maximumf %303, %304 : vector<1x2xf32>
    %306 = vector.extract_strided_slice %302 {offsets = [2, 0], sizes = [1, 2], strides = [1, 1]} : vector<7x2xf32> to vector<1x2xf32>
    %307 = vector.extract_strided_slice %302 {offsets = [3, 0], sizes = [1, 2], strides = [1, 1]} : vector<7x2xf32> to vector<1x2xf32>
    %308 = arith.maximumf %306, %307 : vector<1x2xf32>
    %309 = vector.extract_strided_slice %302 {offsets = [4, 0], sizes = [1, 2], strides = [1, 1]} : vector<7x2xf32> to vector<1x2xf32>
    %310 = vector.extract_strided_slice %302 {offsets = [5, 0], sizes = [1, 2], strides = [1, 1]} : vector<7x2xf32> to vector<1x2xf32>
    %311 = arith.maximumf %309, %310 : vector<1x2xf32>
    %312 = vector.extract_strided_slice %42 {offsets = [0, 0], sizes = [7, 2], strides = [1, 1]} : vector<9x2xf32> to vector<7x2xf32>
    %c2_74 = arith.constant 2 : index
    %c0_75 = arith.constant 0 : index
    %313 = memref.load %arg4[%c2_74, %c0_75] : memref<4x12xf32, #tpu.memory_space<smem>>
    %314 = vector.broadcast %313 : f32 to vector<7x2xf32>
    %315 = arith.mulf %312, %314 : vector<7x2xf32>
    %316 = vector.extract_strided_slice %42 {offsets = [1, 0], sizes = [7, 2], strides = [1, 1]} : vector<9x2xf32> to vector<7x2xf32>
    %c2_76 = arith.constant 2 : index
    %c1_77 = arith.constant 1 : index
    %317 = memref.load %arg4[%c2_76, %c1_77] : memref<4x12xf32, #tpu.memory_space<smem>>
    %318 = vector.broadcast %317 : f32 to vector<7x2xf32>
    %319 = arith.mulf %316, %318 : vector<7x2xf32>
    %320 = arith.addf %315, %319 : vector<7x2xf32>
    %321 = vector.extract_strided_slice %42 {offsets = [2, 0], sizes = [7, 2], strides = [1, 1]} : vector<9x2xf32> to vector<7x2xf32>
    %c2_78 = arith.constant 2 : index
    %c2_79 = arith.constant 2 : index
    %322 = memref.load %arg4[%c2_78, %c2_79] : memref<4x12xf32, #tpu.memory_space<smem>>
    %323 = vector.broadcast %322 : f32 to vector<7x2xf32>
    %324 = arith.mulf %321, %323 : vector<7x2xf32>
    %325 = arith.addf %320, %324 : vector<7x2xf32>
    %326 = vector.extract_strided_slice %83 {offsets = [0, 0], sizes = [7, 2], strides = [1, 1]} : vector<9x2xf32> to vector<7x2xf32>
    %c2_80 = arith.constant 2 : index
    %c3_81 = arith.constant 3 : index
    %327 = memref.load %arg4[%c2_80, %c3_81] : memref<4x12xf32, #tpu.memory_space<smem>>
    %328 = vector.broadcast %327 : f32 to vector<7x2xf32>
    %329 = arith.mulf %326, %328 : vector<7x2xf32>
    %330 = arith.addf %325, %329 : vector<7x2xf32>
    %331 = vector.extract_strided_slice %83 {offsets = [1, 0], sizes = [7, 2], strides = [1, 1]} : vector<9x2xf32> to vector<7x2xf32>
    %c2_82 = arith.constant 2 : index
    %c4_83 = arith.constant 4 : index
    %332 = memref.load %arg4[%c2_82, %c4_83] : memref<4x12xf32, #tpu.memory_space<smem>>
    %333 = vector.broadcast %332 : f32 to vector<7x2xf32>
    %334 = arith.mulf %331, %333 : vector<7x2xf32>
    %335 = arith.addf %330, %334 : vector<7x2xf32>
    %336 = vector.extract_strided_slice %83 {offsets = [2, 0], sizes = [7, 2], strides = [1, 1]} : vector<9x2xf32> to vector<7x2xf32>
    %c2_84 = arith.constant 2 : index
    %c5_85 = arith.constant 5 : index
    %337 = memref.load %arg4[%c2_84, %c5_85] : memref<4x12xf32, #tpu.memory_space<smem>>
    %338 = vector.broadcast %337 : f32 to vector<7x2xf32>
    %339 = arith.mulf %336, %338 : vector<7x2xf32>
    %340 = arith.addf %335, %339 : vector<7x2xf32>
    %341 = vector.extract_strided_slice %124 {offsets = [0, 0], sizes = [7, 2], strides = [1, 1]} : vector<9x2xf32> to vector<7x2xf32>
    %c2_86 = arith.constant 2 : index
    %c6_87 = arith.constant 6 : index
    %342 = memref.load %arg4[%c2_86, %c6_87] : memref<4x12xf32, #tpu.memory_space<smem>>
    %343 = vector.broadcast %342 : f32 to vector<7x2xf32>
    %344 = arith.mulf %341, %343 : vector<7x2xf32>
    %345 = arith.addf %340, %344 : vector<7x2xf32>
    %346 = vector.extract_strided_slice %124 {offsets = [1, 0], sizes = [7, 2], strides = [1, 1]} : vector<9x2xf32> to vector<7x2xf32>
    %c2_88 = arith.constant 2 : index
    %c7_89 = arith.constant 7 : index
    %347 = memref.load %arg4[%c2_88, %c7_89] : memref<4x12xf32, #tpu.memory_space<smem>>
    %348 = vector.broadcast %347 : f32 to vector<7x2xf32>
    %349 = arith.mulf %346, %348 : vector<7x2xf32>
    %350 = arith.addf %345, %349 : vector<7x2xf32>
    %351 = vector.extract_strided_slice %124 {offsets = [2, 0], sizes = [7, 2], strides = [1, 1]} : vector<9x2xf32> to vector<7x2xf32>
    %c2_90 = arith.constant 2 : index
    %c8_91 = arith.constant 8 : index
    %352 = memref.load %arg4[%c2_90, %c8_91] : memref<4x12xf32, #tpu.memory_space<smem>>
    %353 = vector.broadcast %352 : f32 to vector<7x2xf32>
    %354 = arith.mulf %351, %353 : vector<7x2xf32>
    %355 = arith.addf %350, %354 : vector<7x2xf32>
    %356 = vector.extract_strided_slice %165 {offsets = [0, 0], sizes = [7, 2], strides = [1, 1]} : vector<9x2xf32> to vector<7x2xf32>
    %c2_92 = arith.constant 2 : index
    %c9_93 = arith.constant 9 : index
    %357 = memref.load %arg4[%c2_92, %c9_93] : memref<4x12xf32, #tpu.memory_space<smem>>
    %358 = vector.broadcast %357 : f32 to vector<7x2xf32>
    %359 = arith.mulf %356, %358 : vector<7x2xf32>
    %360 = arith.addf %355, %359 : vector<7x2xf32>
    %361 = vector.extract_strided_slice %165 {offsets = [1, 0], sizes = [7, 2], strides = [1, 1]} : vector<9x2xf32> to vector<7x2xf32>
    %c2_94 = arith.constant 2 : index
    %c10_95 = arith.constant 10 : index
    %362 = memref.load %arg4[%c2_94, %c10_95] : memref<4x12xf32, #tpu.memory_space<smem>>
    %363 = vector.broadcast %362 : f32 to vector<7x2xf32>
    %364 = arith.mulf %361, %363 : vector<7x2xf32>
    %365 = arith.addf %360, %364 : vector<7x2xf32>
    %366 = vector.extract_strided_slice %165 {offsets = [2, 0], sizes = [7, 2], strides = [1, 1]} : vector<9x2xf32> to vector<7x2xf32>
    %c2_96 = arith.constant 2 : index
    %c11_97 = arith.constant 11 : index
    %367 = memref.load %arg4[%c2_96, %c11_97] : memref<4x12xf32, #tpu.memory_space<smem>>
    %368 = vector.broadcast %367 : f32 to vector<7x2xf32>
    %369 = arith.mulf %366, %368 : vector<7x2xf32>
    %370 = arith.addf %365, %369 : vector<7x2xf32>
    %c2_98 = arith.constant 2 : index
    %371 = memref.load %arg5[%c2_98] : memref<4xf32, #tpu.memory_space<smem>>
    %372 = vector.broadcast %371 : f32 to vector<7x2xf32>
    %373 = arith.addf %370, %372 : vector<7x2xf32>
    %cst_99 = arith.constant 0.000000e+00 : f32
    %374 = vector.broadcast %cst_99 : f32 to vector<7x2xf32>
    %375 = arith.maximumf %373, %374 : vector<7x2xf32>
    %376 = vector.extract_strided_slice %375 {offsets = [0, 0], sizes = [1, 2], strides = [1, 1]} : vector<7x2xf32> to vector<1x2xf32>
    %377 = vector.extract_strided_slice %375 {offsets = [1, 0], sizes = [1, 2], strides = [1, 1]} : vector<7x2xf32> to vector<1x2xf32>
    %378 = arith.maximumf %376, %377 : vector<1x2xf32>
    %379 = vector.extract_strided_slice %375 {offsets = [2, 0], sizes = [1, 2], strides = [1, 1]} : vector<7x2xf32> to vector<1x2xf32>
    %380 = vector.extract_strided_slice %375 {offsets = [3, 0], sizes = [1, 2], strides = [1, 1]} : vector<7x2xf32> to vector<1x2xf32>
    %381 = arith.maximumf %379, %380 : vector<1x2xf32>
    %382 = vector.extract_strided_slice %375 {offsets = [4, 0], sizes = [1, 2], strides = [1, 1]} : vector<7x2xf32> to vector<1x2xf32>
    %383 = vector.extract_strided_slice %375 {offsets = [5, 0], sizes = [1, 2], strides = [1, 1]} : vector<7x2xf32> to vector<1x2xf32>
    %384 = arith.maximumf %382, %383 : vector<1x2xf32>
    %385 = vector.extract_strided_slice %42 {offsets = [0, 0], sizes = [7, 2], strides = [1, 1]} : vector<9x2xf32> to vector<7x2xf32>
    %c3_100 = arith.constant 3 : index
    %c0_101 = arith.constant 0 : index
    %386 = memref.load %arg4[%c3_100, %c0_101] : memref<4x12xf32, #tpu.memory_space<smem>>
    %387 = vector.broadcast %386 : f32 to vector<7x2xf32>
    %388 = arith.mulf %385, %387 : vector<7x2xf32>
    %389 = vector.extract_strided_slice %42 {offsets = [1, 0], sizes = [7, 2], strides = [1, 1]} : vector<9x2xf32> to vector<7x2xf32>
    %c3_102 = arith.constant 3 : index
    %c1_103 = arith.constant 1 : index
    %390 = memref.load %arg4[%c3_102, %c1_103] : memref<4x12xf32, #tpu.memory_space<smem>>
    %391 = vector.broadcast %390 : f32 to vector<7x2xf32>
    %392 = arith.mulf %389, %391 : vector<7x2xf32>
    %393 = arith.addf %388, %392 : vector<7x2xf32>
    %394 = vector.extract_strided_slice %42 {offsets = [2, 0], sizes = [7, 2], strides = [1, 1]} : vector<9x2xf32> to vector<7x2xf32>
    %c3_104 = arith.constant 3 : index
    %c2_105 = arith.constant 2 : index
    %395 = memref.load %arg4[%c3_104, %c2_105] : memref<4x12xf32, #tpu.memory_space<smem>>
    %396 = vector.broadcast %395 : f32 to vector<7x2xf32>
    %397 = arith.mulf %394, %396 : vector<7x2xf32>
    %398 = arith.addf %393, %397 : vector<7x2xf32>
    %399 = vector.extract_strided_slice %83 {offsets = [0, 0], sizes = [7, 2], strides = [1, 1]} : vector<9x2xf32> to vector<7x2xf32>
    %c3_106 = arith.constant 3 : index
    %c3_107 = arith.constant 3 : index
    %400 = memref.load %arg4[%c3_106, %c3_107] : memref<4x12xf32, #tpu.memory_space<smem>>
    %401 = vector.broadcast %400 : f32 to vector<7x2xf32>
    %402 = arith.mulf %399, %401 : vector<7x2xf32>
    %403 = arith.addf %398, %402 : vector<7x2xf32>
    %404 = vector.extract_strided_slice %83 {offsets = [1, 0], sizes = [7, 2], strides = [1, 1]} : vector<9x2xf32> to vector<7x2xf32>
    %c3_108 = arith.constant 3 : index
    %c4_109 = arith.constant 4 : index
    %405 = memref.load %arg4[%c3_108, %c4_109] : memref<4x12xf32, #tpu.memory_space<smem>>
    %406 = vector.broadcast %405 : f32 to vector<7x2xf32>
    %407 = arith.mulf %404, %406 : vector<7x2xf32>
    %408 = arith.addf %403, %407 : vector<7x2xf32>
    %409 = vector.extract_strided_slice %83 {offsets = [2, 0], sizes = [7, 2], strides = [1, 1]} : vector<9x2xf32> to vector<7x2xf32>
    %c3_110 = arith.constant 3 : index
    %c5_111 = arith.constant 5 : index
    %410 = memref.load %arg4[%c3_110, %c5_111] : memref<4x12xf32, #tpu.memory_space<smem>>
    %411 = vector.broadcast %410 : f32 to vector<7x2xf32>
    %412 = arith.mulf %409, %411 : vector<7x2xf32>
    %413 = arith.addf %408, %412 : vector<7x2xf32>
    %414 = vector.extract_strided_slice %124 {offsets = [0, 0], sizes = [7, 2], strides = [1, 1]} : vector<9x2xf32> to vector<7x2xf32>
    %c3_112 = arith.constant 3 : index
    %c6_113 = arith.constant 6 : index
    %415 = memref.load %arg4[%c3_112, %c6_113] : memref<4x12xf32, #tpu.memory_space<smem>>
    %416 = vector.broadcast %415 : f32 to vector<7x2xf32>
    %417 = arith.mulf %414, %416 : vector<7x2xf32>
    %418 = arith.addf %413, %417 : vector<7x2xf32>
    %419 = vector.extract_strided_slice %124 {offsets = [1, 0], sizes = [7, 2], strides = [1, 1]} : vector<9x2xf32> to vector<7x2xf32>
    %c3_114 = arith.constant 3 : index
    %c7_115 = arith.constant 7 : index
    %420 = memref.load %arg4[%c3_114, %c7_115] : memref<4x12xf32, #tpu.memory_space<smem>>
    %421 = vector.broadcast %420 : f32 to vector<7x2xf32>
    %422 = arith.mulf %419, %421 : vector<7x2xf32>
    %423 = arith.addf %418, %422 : vector<7x2xf32>
    %424 = vector.extract_strided_slice %124 {offsets = [2, 0], sizes = [7, 2], strides = [1, 1]} : vector<9x2xf32> to vector<7x2xf32>
    %c3_116 = arith.constant 3 : index
    %c8_117 = arith.constant 8 : index
    %425 = memref.load %arg4[%c3_116, %c8_117] : memref<4x12xf32, #tpu.memory_space<smem>>
    %426 = vector.broadcast %425 : f32 to vector<7x2xf32>
    %427 = arith.mulf %424, %426 : vector<7x2xf32>
    %428 = arith.addf %423, %427 : vector<7x2xf32>
    %429 = vector.extract_strided_slice %165 {offsets = [0, 0], sizes = [7, 2], strides = [1, 1]} : vector<9x2xf32> to vector<7x2xf32>
    %c3_118 = arith.constant 3 : index
    %c9_119 = arith.constant 9 : index
    %430 = memref.load %arg4[%c3_118, %c9_119] : memref<4x12xf32, #tpu.memory_space<smem>>
    %431 = vector.broadcast %430 : f32 to vector<7x2xf32>
    %432 = arith.mulf %429, %431 : vector<7x2xf32>
    %433 = arith.addf %428, %432 : vector<7x2xf32>
    %434 = vector.extract_strided_slice %165 {offsets = [1, 0], sizes = [7, 2], strides = [1, 1]} : vector<9x2xf32> to vector<7x2xf32>
    %c3_120 = arith.constant 3 : index
    %c10_121 = arith.constant 10 : index
    %435 = memref.load %arg4[%c3_120, %c10_121] : memref<4x12xf32, #tpu.memory_space<smem>>
    %436 = vector.broadcast %435 : f32 to vector<7x2xf32>
    %437 = arith.mulf %434, %436 : vector<7x2xf32>
    %438 = arith.addf %433, %437 : vector<7x2xf32>
    %439 = vector.extract_strided_slice %165 {offsets = [2, 0], sizes = [7, 2], strides = [1, 1]} : vector<9x2xf32> to vector<7x2xf32>
    %c3_122 = arith.constant 3 : index
    %c11_123 = arith.constant 11 : index
    %440 = memref.load %arg4[%c3_122, %c11_123] : memref<4x12xf32, #tpu.memory_space<smem>>
    %441 = vector.broadcast %440 : f32 to vector<7x2xf32>
    %442 = arith.mulf %439, %441 : vector<7x2xf32>
    %443 = arith.addf %438, %442 : vector<7x2xf32>
    %c3_124 = arith.constant 3 : index
    %444 = memref.load %arg5[%c3_124] : memref<4xf32, #tpu.memory_space<smem>>
    %445 = vector.broadcast %444 : f32 to vector<7x2xf32>
    %446 = arith.addf %443, %445 : vector<7x2xf32>
    %cst_125 = arith.constant 0.000000e+00 : f32
    %447 = vector.broadcast %cst_125 : f32 to vector<7x2xf32>
    %448 = arith.maximumf %446, %447 : vector<7x2xf32>
    %449 = vector.extract_strided_slice %448 {offsets = [0, 0], sizes = [1, 2], strides = [1, 1]} : vector<7x2xf32> to vector<1x2xf32>
    %450 = vector.extract_strided_slice %448 {offsets = [1, 0], sizes = [1, 2], strides = [1, 1]} : vector<7x2xf32> to vector<1x2xf32>
    %451 = arith.maximumf %449, %450 : vector<1x2xf32>
    %452 = vector.extract_strided_slice %448 {offsets = [2, 0], sizes = [1, 2], strides = [1, 1]} : vector<7x2xf32> to vector<1x2xf32>
    %453 = vector.extract_strided_slice %448 {offsets = [3, 0], sizes = [1, 2], strides = [1, 1]} : vector<7x2xf32> to vector<1x2xf32>
    %454 = arith.maximumf %452, %453 : vector<1x2xf32>
    %455 = vector.extract_strided_slice %448 {offsets = [4, 0], sizes = [1, 2], strides = [1, 1]} : vector<7x2xf32> to vector<1x2xf32>
    %456 = vector.extract_strided_slice %448 {offsets = [5, 0], sizes = [1, 2], strides = [1, 1]} : vector<7x2xf32> to vector<1x2xf32>
    %457 = arith.maximumf %455, %456 : vector<1x2xf32>
    %c0_126 = arith.constant 0 : index
    %c0_127 = arith.constant 0 : index
    %458 = memref.load %arg6[%c0_126, %c0_127] : memref<4x12xf32, #tpu.memory_space<smem>>
    %459 = vector.broadcast %458 : f32 to vector<1x2xf32>
    %460 = arith.mulf %232, %459 : vector<1x2xf32>
    %c0_128 = arith.constant 0 : index
    %c1_129 = arith.constant 1 : index
    %461 = memref.load %arg6[%c0_128, %c1_129] : memref<4x12xf32, #tpu.memory_space<smem>>
    %462 = vector.broadcast %461 : f32 to vector<1x2xf32>
    %463 = arith.mulf %235, %462 : vector<1x2xf32>
    %464 = arith.addf %460, %463 : vector<1x2xf32>
    %c0_130 = arith.constant 0 : index
    %c2_131 = arith.constant 2 : index
    %465 = memref.load %arg6[%c0_130, %c2_131] : memref<4x12xf32, #tpu.memory_space<smem>>
    %466 = vector.broadcast %465 : f32 to vector<1x2xf32>
    %467 = arith.mulf %238, %466 : vector<1x2xf32>
    %468 = arith.addf %464, %467 : vector<1x2xf32>
    %c0_132 = arith.constant 0 : index
    %c3_133 = arith.constant 3 : index
    %469 = memref.load %arg6[%c0_132, %c3_133] : memref<4x12xf32, #tpu.memory_space<smem>>
    %470 = vector.broadcast %469 : f32 to vector<1x2xf32>
    %471 = arith.mulf %305, %470 : vector<1x2xf32>
    %472 = arith.addf %468, %471 : vector<1x2xf32>
    %c0_134 = arith.constant 0 : index
    %c4_135 = arith.constant 4 : index
    %473 = memref.load %arg6[%c0_134, %c4_135] : memref<4x12xf32, #tpu.memory_space<smem>>
    %474 = vector.broadcast %473 : f32 to vector<1x2xf32>
    %475 = arith.mulf %308, %474 : vector<1x2xf32>
    %476 = arith.addf %472, %475 : vector<1x2xf32>
    %c0_136 = arith.constant 0 : index
    %c5_137 = arith.constant 5 : index
    %477 = memref.load %arg6[%c0_136, %c5_137] : memref<4x12xf32, #tpu.memory_space<smem>>
    %478 = vector.broadcast %477 : f32 to vector<1x2xf32>
    %479 = arith.mulf %311, %478 : vector<1x2xf32>
    %480 = arith.addf %476, %479 : vector<1x2xf32>
    %c0_138 = arith.constant 0 : index
    %c6_139 = arith.constant 6 : index
    %481 = memref.load %arg6[%c0_138, %c6_139] : memref<4x12xf32, #tpu.memory_space<smem>>
    %482 = vector.broadcast %481 : f32 to vector<1x2xf32>
    %483 = arith.mulf %378, %482 : vector<1x2xf32>
    %484 = arith.addf %480, %483 : vector<1x2xf32>
    %c0_140 = arith.constant 0 : index
    %c7_141 = arith.constant 7 : index
    %485 = memref.load %arg6[%c0_140, %c7_141] : memref<4x12xf32, #tpu.memory_space<smem>>
    %486 = vector.broadcast %485 : f32 to vector<1x2xf32>
    %487 = arith.mulf %381, %486 : vector<1x2xf32>
    %488 = arith.addf %484, %487 : vector<1x2xf32>
    %c0_142 = arith.constant 0 : index
    %c8_143 = arith.constant 8 : index
    %489 = memref.load %arg6[%c0_142, %c8_143] : memref<4x12xf32, #tpu.memory_space<smem>>
    %490 = vector.broadcast %489 : f32 to vector<1x2xf32>
    %491 = arith.mulf %384, %490 : vector<1x2xf32>
    %492 = arith.addf %488, %491 : vector<1x2xf32>
    %c0_144 = arith.constant 0 : index
    %c9_145 = arith.constant 9 : index
    %493 = memref.load %arg6[%c0_144, %c9_145] : memref<4x12xf32, #tpu.memory_space<smem>>
    %494 = vector.broadcast %493 : f32 to vector<1x2xf32>
    %495 = arith.mulf %451, %494 : vector<1x2xf32>
    %496 = arith.addf %492, %495 : vector<1x2xf32>
    %c0_146 = arith.constant 0 : index
    %c10_147 = arith.constant 10 : index
    %497 = memref.load %arg6[%c0_146, %c10_147] : memref<4x12xf32, #tpu.memory_space<smem>>
    %498 = vector.broadcast %497 : f32 to vector<1x2xf32>
    %499 = arith.mulf %454, %498 : vector<1x2xf32>
    %500 = arith.addf %496, %499 : vector<1x2xf32>
    %c0_148 = arith.constant 0 : index
    %c11_149 = arith.constant 11 : index
    %501 = memref.load %arg6[%c0_148, %c11_149] : memref<4x12xf32, #tpu.memory_space<smem>>
    %502 = vector.broadcast %501 : f32 to vector<1x2xf32>
    %503 = arith.mulf %457, %502 : vector<1x2xf32>
    %504 = arith.addf %500, %503 : vector<1x2xf32>
    %c0_150 = arith.constant 0 : index
    %505 = memref.load %arg7[%c0_150] : memref<4xf32, #tpu.memory_space<smem>>
    %506 = vector.broadcast %505 : f32 to vector<1x2xf32>
    %507 = arith.addf %504, %506 : vector<1x2xf32>
    %cst_151 = arith.constant 0.000000e+00 : f32
    %508 = vector.broadcast %cst_151 : f32 to vector<1x2xf32>
    %509 = arith.maximumf %507, %508 : vector<1x2xf32>
    %c1_152 = arith.constant 1 : index
    %c0_153 = arith.constant 0 : index
    %510 = memref.load %arg6[%c1_152, %c0_153] : memref<4x12xf32, #tpu.memory_space<smem>>
    %511 = vector.broadcast %510 : f32 to vector<1x2xf32>
    %512 = arith.mulf %232, %511 : vector<1x2xf32>
    %c1_154 = arith.constant 1 : index
    %c1_155 = arith.constant 1 : index
    %513 = memref.load %arg6[%c1_154, %c1_155] : memref<4x12xf32, #tpu.memory_space<smem>>
    %514 = vector.broadcast %513 : f32 to vector<1x2xf32>
    %515 = arith.mulf %235, %514 : vector<1x2xf32>
    %516 = arith.addf %512, %515 : vector<1x2xf32>
    %c1_156 = arith.constant 1 : index
    %c2_157 = arith.constant 2 : index
    %517 = memref.load %arg6[%c1_156, %c2_157] : memref<4x12xf32, #tpu.memory_space<smem>>
    %518 = vector.broadcast %517 : f32 to vector<1x2xf32>
    %519 = arith.mulf %238, %518 : vector<1x2xf32>
    %520 = arith.addf %516, %519 : vector<1x2xf32>
    %c1_158 = arith.constant 1 : index
    %c3_159 = arith.constant 3 : index
    %521 = memref.load %arg6[%c1_158, %c3_159] : memref<4x12xf32, #tpu.memory_space<smem>>
    %522 = vector.broadcast %521 : f32 to vector<1x2xf32>
    %523 = arith.mulf %305, %522 : vector<1x2xf32>
    %524 = arith.addf %520, %523 : vector<1x2xf32>
    %c1_160 = arith.constant 1 : index
    %c4_161 = arith.constant 4 : index
    %525 = memref.load %arg6[%c1_160, %c4_161] : memref<4x12xf32, #tpu.memory_space<smem>>
    %526 = vector.broadcast %525 : f32 to vector<1x2xf32>
    %527 = arith.mulf %308, %526 : vector<1x2xf32>
    %528 = arith.addf %524, %527 : vector<1x2xf32>
    %c1_162 = arith.constant 1 : index
    %c5_163 = arith.constant 5 : index
    %529 = memref.load %arg6[%c1_162, %c5_163] : memref<4x12xf32, #tpu.memory_space<smem>>
    %530 = vector.broadcast %529 : f32 to vector<1x2xf32>
    %531 = arith.mulf %311, %530 : vector<1x2xf32>
    %532 = arith.addf %528, %531 : vector<1x2xf32>
    %c1_164 = arith.constant 1 : index
    %c6_165 = arith.constant 6 : index
    %533 = memref.load %arg6[%c1_164, %c6_165] : memref<4x12xf32, #tpu.memory_space<smem>>
    %534 = vector.broadcast %533 : f32 to vector<1x2xf32>
    %535 = arith.mulf %378, %534 : vector<1x2xf32>
    %536 = arith.addf %532, %535 : vector<1x2xf32>
    %c1_166 = arith.constant 1 : index
    %c7_167 = arith.constant 7 : index
    %537 = memref.load %arg6[%c1_166, %c7_167] : memref<4x12xf32, #tpu.memory_space<smem>>
    %538 = vector.broadcast %537 : f32 to vector<1x2xf32>
    %539 = arith.mulf %381, %538 : vector<1x2xf32>
    %540 = arith.addf %536, %539 : vector<1x2xf32>
    %c1_168 = arith.constant 1 : index
    %c8_169 = arith.constant 8 : index
    %541 = memref.load %arg6[%c1_168, %c8_169] : memref<4x12xf32, #tpu.memory_space<smem>>
    %542 = vector.broadcast %541 : f32 to vector<1x2xf32>
    %543 = arith.mulf %384, %542 : vector<1x2xf32>
    %544 = arith.addf %540, %543 : vector<1x2xf32>
    %c1_170 = arith.constant 1 : index
    %c9_171 = arith.constant 9 : index
    %545 = memref.load %arg6[%c1_170, %c9_171] : memref<4x12xf32, #tpu.memory_space<smem>>
    %546 = vector.broadcast %545 : f32 to vector<1x2xf32>
    %547 = arith.mulf %451, %546 : vector<1x2xf32>
    %548 = arith.addf %544, %547 : vector<1x2xf32>
    %c1_172 = arith.constant 1 : index
    %c10_173 = arith.constant 10 : index
    %549 = memref.load %arg6[%c1_172, %c10_173] : memref<4x12xf32, #tpu.memory_space<smem>>
    %550 = vector.broadcast %549 : f32 to vector<1x2xf32>
    %551 = arith.mulf %454, %550 : vector<1x2xf32>
    %552 = arith.addf %548, %551 : vector<1x2xf32>
    %c1_174 = arith.constant 1 : index
    %c11_175 = arith.constant 11 : index
    %553 = memref.load %arg6[%c1_174, %c11_175] : memref<4x12xf32, #tpu.memory_space<smem>>
    %554 = vector.broadcast %553 : f32 to vector<1x2xf32>
    %555 = arith.mulf %457, %554 : vector<1x2xf32>
    %556 = arith.addf %552, %555 : vector<1x2xf32>
    %c1_176 = arith.constant 1 : index
    %557 = memref.load %arg7[%c1_176] : memref<4xf32, #tpu.memory_space<smem>>
    %558 = vector.broadcast %557 : f32 to vector<1x2xf32>
    %559 = arith.addf %556, %558 : vector<1x2xf32>
    %cst_177 = arith.constant 0.000000e+00 : f32
    %560 = vector.broadcast %cst_177 : f32 to vector<1x2xf32>
    %561 = arith.maximumf %559, %560 : vector<1x2xf32>
    %c2_178 = arith.constant 2 : index
    %c0_179 = arith.constant 0 : index
    %562 = memref.load %arg6[%c2_178, %c0_179] : memref<4x12xf32, #tpu.memory_space<smem>>
    %563 = vector.broadcast %562 : f32 to vector<1x2xf32>
    %564 = arith.mulf %232, %563 : vector<1x2xf32>
    %c2_180 = arith.constant 2 : index
    %c1_181 = arith.constant 1 : index
    %565 = memref.load %arg6[%c2_180, %c1_181] : memref<4x12xf32, #tpu.memory_space<smem>>
    %566 = vector.broadcast %565 : f32 to vector<1x2xf32>
    %567 = arith.mulf %235, %566 : vector<1x2xf32>
    %568 = arith.addf %564, %567 : vector<1x2xf32>
    %c2_182 = arith.constant 2 : index
    %c2_183 = arith.constant 2 : index
    %569 = memref.load %arg6[%c2_182, %c2_183] : memref<4x12xf32, #tpu.memory_space<smem>>
    %570 = vector.broadcast %569 : f32 to vector<1x2xf32>
    %571 = arith.mulf %238, %570 : vector<1x2xf32>
    %572 = arith.addf %568, %571 : vector<1x2xf32>
    %c2_184 = arith.constant 2 : index
    %c3_185 = arith.constant 3 : index
    %573 = memref.load %arg6[%c2_184, %c3_185] : memref<4x12xf32, #tpu.memory_space<smem>>
    %574 = vector.broadcast %573 : f32 to vector<1x2xf32>
    %575 = arith.mulf %305, %574 : vector<1x2xf32>
    %576 = arith.addf %572, %575 : vector<1x2xf32>
    %c2_186 = arith.constant 2 : index
    %c4_187 = arith.constant 4 : index
    %577 = memref.load %arg6[%c2_186, %c4_187] : memref<4x12xf32, #tpu.memory_space<smem>>
    %578 = vector.broadcast %577 : f32 to vector<1x2xf32>
    %579 = arith.mulf %308, %578 : vector<1x2xf32>
    %580 = arith.addf %576, %579 : vector<1x2xf32>
    %c2_188 = arith.constant 2 : index
    %c5_189 = arith.constant 5 : index
    %581 = memref.load %arg6[%c2_188, %c5_189] : memref<4x12xf32, #tpu.memory_space<smem>>
    %582 = vector.broadcast %581 : f32 to vector<1x2xf32>
    %583 = arith.mulf %311, %582 : vector<1x2xf32>
    %584 = arith.addf %580, %583 : vector<1x2xf32>
    %c2_190 = arith.constant 2 : index
    %c6_191 = arith.constant 6 : index
    %585 = memref.load %arg6[%c2_190, %c6_191] : memref<4x12xf32, #tpu.memory_space<smem>>
    %586 = vector.broadcast %585 : f32 to vector<1x2xf32>
    %587 = arith.mulf %378, %586 : vector<1x2xf32>
    %588 = arith.addf %584, %587 : vector<1x2xf32>
    %c2_192 = arith.constant 2 : index
    %c7_193 = arith.constant 7 : index
    %589 = memref.load %arg6[%c2_192, %c7_193] : memref<4x12xf32, #tpu.memory_space<smem>>
    %590 = vector.broadcast %589 : f32 to vector<1x2xf32>
    %591 = arith.mulf %381, %590 : vector<1x2xf32>
    %592 = arith.addf %588, %591 : vector<1x2xf32>
    %c2_194 = arith.constant 2 : index
    %c8_195 = arith.constant 8 : index
    %593 = memref.load %arg6[%c2_194, %c8_195] : memref<4x12xf32, #tpu.memory_space<smem>>
    %594 = vector.broadcast %593 : f32 to vector<1x2xf32>
    %595 = arith.mulf %384, %594 : vector<1x2xf32>
    %596 = arith.addf %592, %595 : vector<1x2xf32>
    %c2_196 = arith.constant 2 : index
    %c9_197 = arith.constant 9 : index
    %597 = memref.load %arg6[%c2_196, %c9_197] : memref<4x12xf32, #tpu.memory_space<smem>>
    %598 = vector.broadcast %597 : f32 to vector<1x2xf32>
    %599 = arith.mulf %451, %598 : vector<1x2xf32>
    %600 = arith.addf %596, %599 : vector<1x2xf32>
    %c2_198 = arith.constant 2 : index
    %c10_199 = arith.constant 10 : index
    %601 = memref.load %arg6[%c2_198, %c10_199] : memref<4x12xf32, #tpu.memory_space<smem>>
    %602 = vector.broadcast %601 : f32 to vector<1x2xf32>
    %603 = arith.mulf %454, %602 : vector<1x2xf32>
    %604 = arith.addf %600, %603 : vector<1x2xf32>
    %c2_200 = arith.constant 2 : index
    %c11_201 = arith.constant 11 : index
    %605 = memref.load %arg6[%c2_200, %c11_201] : memref<4x12xf32, #tpu.memory_space<smem>>
    %606 = vector.broadcast %605 : f32 to vector<1x2xf32>
    %607 = arith.mulf %457, %606 : vector<1x2xf32>
    %608 = arith.addf %604, %607 : vector<1x2xf32>
    %c2_202 = arith.constant 2 : index
    %609 = memref.load %arg7[%c2_202] : memref<4xf32, #tpu.memory_space<smem>>
    %610 = vector.broadcast %609 : f32 to vector<1x2xf32>
    %611 = arith.addf %608, %610 : vector<1x2xf32>
    %cst_203 = arith.constant 0.000000e+00 : f32
    %612 = vector.broadcast %cst_203 : f32 to vector<1x2xf32>
    %613 = arith.maximumf %611, %612 : vector<1x2xf32>
    %c3_204 = arith.constant 3 : index
    %c0_205 = arith.constant 0 : index
    %614 = memref.load %arg6[%c3_204, %c0_205] : memref<4x12xf32, #tpu.memory_space<smem>>
    %615 = vector.broadcast %614 : f32 to vector<1x2xf32>
    %616 = arith.mulf %232, %615 : vector<1x2xf32>
    %c3_206 = arith.constant 3 : index
    %c1_207 = arith.constant 1 : index
    %617 = memref.load %arg6[%c3_206, %c1_207] : memref<4x12xf32, #tpu.memory_space<smem>>
    %618 = vector.broadcast %617 : f32 to vector<1x2xf32>
    %619 = arith.mulf %235, %618 : vector<1x2xf32>
    %620 = arith.addf %616, %619 : vector<1x2xf32>
    %c3_208 = arith.constant 3 : index
    %c2_209 = arith.constant 2 : index
    %621 = memref.load %arg6[%c3_208, %c2_209] : memref<4x12xf32, #tpu.memory_space<smem>>
    %622 = vector.broadcast %621 : f32 to vector<1x2xf32>
    %623 = arith.mulf %238, %622 : vector<1x2xf32>
    %624 = arith.addf %620, %623 : vector<1x2xf32>
    %c3_210 = arith.constant 3 : index
    %c3_211 = arith.constant 3 : index
    %625 = memref.load %arg6[%c3_210, %c3_211] : memref<4x12xf32, #tpu.memory_space<smem>>
    %626 = vector.broadcast %625 : f32 to vector<1x2xf32>
    %627 = arith.mulf %305, %626 : vector<1x2xf32>
    %628 = arith.addf %624, %627 : vector<1x2xf32>
    %c3_212 = arith.constant 3 : index
    %c4_213 = arith.constant 4 : index
    %629 = memref.load %arg6[%c3_212, %c4_213] : memref<4x12xf32, #tpu.memory_space<smem>>
    %630 = vector.broadcast %629 : f32 to vector<1x2xf32>
    %631 = arith.mulf %308, %630 : vector<1x2xf32>
    %632 = arith.addf %628, %631 : vector<1x2xf32>
    %c3_214 = arith.constant 3 : index
    %c5_215 = arith.constant 5 : index
    %633 = memref.load %arg6[%c3_214, %c5_215] : memref<4x12xf32, #tpu.memory_space<smem>>
    %634 = vector.broadcast %633 : f32 to vector<1x2xf32>
    %635 = arith.mulf %311, %634 : vector<1x2xf32>
    %636 = arith.addf %632, %635 : vector<1x2xf32>
    %c3_216 = arith.constant 3 : index
    %c6_217 = arith.constant 6 : index
    %637 = memref.load %arg6[%c3_216, %c6_217] : memref<4x12xf32, #tpu.memory_space<smem>>
    %638 = vector.broadcast %637 : f32 to vector<1x2xf32>
    %639 = arith.mulf %378, %638 : vector<1x2xf32>
    %640 = arith.addf %636, %639 : vector<1x2xf32>
    %c3_218 = arith.constant 3 : index
    %c7_219 = arith.constant 7 : index
    %641 = memref.load %arg6[%c3_218, %c7_219] : memref<4x12xf32, #tpu.memory_space<smem>>
    %642 = vector.broadcast %641 : f32 to vector<1x2xf32>
    %643 = arith.mulf %381, %642 : vector<1x2xf32>
    %644 = arith.addf %640, %643 : vector<1x2xf32>
    %c3_220 = arith.constant 3 : index
    %c8_221 = arith.constant 8 : index
    %645 = memref.load %arg6[%c3_220, %c8_221] : memref<4x12xf32, #tpu.memory_space<smem>>
    %646 = vector.broadcast %645 : f32 to vector<1x2xf32>
    %647 = arith.mulf %384, %646 : vector<1x2xf32>
    %648 = arith.addf %644, %647 : vector<1x2xf32>
    %c3_222 = arith.constant 3 : index
    %c9_223 = arith.constant 9 : index
    %649 = memref.load %arg6[%c3_222, %c9_223] : memref<4x12xf32, #tpu.memory_space<smem>>
    %650 = vector.broadcast %649 : f32 to vector<1x2xf32>
    %651 = arith.mulf %451, %650 : vector<1x2xf32>
    %652 = arith.addf %648, %651 : vector<1x2xf32>
    %c3_224 = arith.constant 3 : index
    %c10_225 = arith.constant 10 : index
    %653 = memref.load %arg6[%c3_224, %c10_225] : memref<4x12xf32, #tpu.memory_space<smem>>
    %654 = vector.broadcast %653 : f32 to vector<1x2xf32>
    %655 = arith.mulf %454, %654 : vector<1x2xf32>
    %656 = arith.addf %652, %655 : vector<1x2xf32>
    %c3_226 = arith.constant 3 : index
    %c11_227 = arith.constant 11 : index
    %657 = memref.load %arg6[%c3_226, %c11_227] : memref<4x12xf32, #tpu.memory_space<smem>>
    %658 = vector.broadcast %657 : f32 to vector<1x2xf32>
    %659 = arith.mulf %457, %658 : vector<1x2xf32>
    %660 = arith.addf %656, %659 : vector<1x2xf32>
    %c3_228 = arith.constant 3 : index
    %661 = memref.load %arg7[%c3_228] : memref<4xf32, #tpu.memory_space<smem>>
    %662 = vector.broadcast %661 : f32 to vector<1x2xf32>
    %663 = arith.addf %660, %662 : vector<1x2xf32>
    %cst_229 = arith.constant 0.000000e+00 : f32
    %664 = vector.broadcast %cst_229 : f32 to vector<1x2xf32>
    %665 = arith.maximumf %663, %664 : vector<1x2xf32>
    %666 = tpu.concatenate %509, %561, %613, %665 in 0 : vector<1x2xf32>, vector<1x2xf32>, vector<1x2xf32>, vector<1x2xf32> -> vector<4x2xf32>
    %c0_230 = arith.constant 0 : index
    %c0_231 = arith.constant 0 : index
    %667 = vector.load %arg8[%c0_230, %c0_231] : memref<4x2xf32, #tpu.memory_space<vmem>>, vector<4x2xf32>
    tpu.vector_store %arg8[%c0_230, %c0_231], %666 {strides = array<i32>} : memref<4x2xf32, #tpu.memory_space<vmem>>, vector<4x2xf32>,
    return
  }
  func.func @transform_0(%arg0: i32) -> (i32, i32) {
    %c0_i32 = arith.constant 0 : i32
    %c0_i32_0 = arith.constant 0 : i32
    return %c0_i32, %arg0 : i32, i32
  }
  func.func @transform_1(%arg0: i32) -> (i32, i32) {
    %c0_i32 = arith.constant 0 : i32
    %c0_i32_0 = arith.constant 0 : i32
    %c0_i32_1 = arith.constant 0 : i32
    return %c0_i32, %c0_i32_0 : i32, i32
  }
  func.func @transform_2(%arg0: i32) -> i32 {
    %c0_i32 = arith.constant 0 : i32
    %c0_i32_0 = arith.constant 0 : i32
    return %c0_i32 : i32
  }
  func.func @transform_3(%arg0: i32) -> (i32, i32) {
    %c0_i32 = arith.constant 0 : i32
    %c0_i32_0 = arith.constant 0 : i32
    %c0_i32_1 = arith.constant 0 : i32
    return %c0_i32, %c0_i32_0 : i32, i32
  }
  func.func @transform_4(%arg0: i32) -> i32 {
    %c0_i32 = arith.constant 0 : i32
    %c0_i32_0 = arith.constant 0 : i32
    return %c0_i32 : i32
  }
  func.func @transform_5(%arg0: i32) -> (i32, i32) {
    %c0_i32 = arith.constant 0 : i32
    %c0_i32_0 = arith.constant 0 : i32
    %c0_i32_1 = arith.constant 0 : i32
    return %c0_i32, %c0_i32_0 : i32, i32
  }
  func.func @transform_6(%arg0: i32) -> i32 {
    %c0_i32 = arith.constant 0 : i32
    %c0_i32_0 = arith.constant 0 : i32
    return %c0_i32 : i32
  }
  func.func @transform_7(%arg0: i32) -> (i32, i32) {
    %c0_i32 = arith.constant 0 : i32
    %c0_i32_0 = arith.constant 0 : i32
    return %c0_i32, %arg0 : i32, i32
  }
}

</mosaic_0001>

<bundles_post_ra>
// kernel: tpu_custom_call.1
= control target key start
LH: loop header
LB: loop body
LE: loop exit
PB: predicated region body
PF: predicated region fallthrough
CT: control target
= control target key end

     0   :  { %12 = vsyncpa [#allocation3], 0  ;;  %s1897_s0 = inlined_call_operand.vmem [shape: f32[16,2], index: 0, kind: input, shape index: {}]   ;;  %s1898_s1 = inlined_call_operand.vmem [shape: f32[4,3], index: 1, kind: input, shape index: {}]   ;;  %s1899_s2 = inlined_call_operand.vmem [shape: f32[4], index: 2, kind: input, shape index: {}]   ;;  %s1900_s3 = inlined_call_operand.vmem [shape: f32[4,12], index: 3, kind: input, shape index: {}]   ;;  %s1901_s4 = inlined_call_operand.vmem [shape: f32[4], index: 4, kind: input, shape index: {}]   ;;  %s1902_s5 = inlined_call_operand.vmem [shape: f32[4,12], index: 5, kind: input, shape index: {}]   ;;  %s1903_s6 = inlined_call_operand.vmem [shape: f32[4], index: 6, kind: input, shape index: {}]   ;;  %s1904_s7 = inlined_call_operand.vmem [shape: f32[4,2], index: 7, kind: output, shape index: {}]  }
   0x1   :  { %13 = vsyncpa [#allocation5], 0 }
   0x2   :  { %14 = vsyncpa [#allocation8], 0  ;;  %s34_s26 = sshll.u32 %s1899_s2, 4  ;;  %s35_s26 = int_to_ptr.vmem [resolvable:$true] %s34_s26 }
   0x3   :  { %15 = vsyncpa [#allocation11], 0  ;;  %s54_s29 = sshll.u32 %s1901_s4, 4  ;;  %s1188_s30 = scalar_lea.vmem %s35_s26, 16  ;;  %s55_s29 = int_to_ptr.vmem [resolvable:$true] %s54_s29 }
   0x4   :  { %p1189_p0 = scmp.ne.s32.totalorder %s35_s26, %s1188_s30  ;;  %p1193_p1 = scmp.lt.s32.totalorder %s35_s26, %s35_s26 }
   0x5   :  { %p1194_p2 = scmp.lt.s32.totalorder %s1188_s30, %s1188_s30 }
   0x7   :  { %p1195_p3 = por %p1194_p2, %p1193_p1 }
   0x9   :  { %p1196_p4 = pnand %p1195_p3, %p1189_p0 }
   0xb   :  { %1199 = shalt.err (!%p1196_p4)
}
   0xc   :  { %s1268_s8 = smov [#allocation4]   ;;  %s1200_s9 = scalar_lea.vmem %s55_s29, 16 }
   0xd   :  { %37 = dma.vmem_to_smem %s35_s26, 16, %s1268_s8, [#allocation5]  }
   0xe   :  { %p1201_p5 = scmp.ne.s32.totalorder %s55_s29, %s1200_s9  ;;  %p1205_p6 = scmp.lt.s32.totalorder %s55_s29, %s55_s29 }
   0xf   :  { %p1206_p7 = scmp.lt.s32.totalorder %s1200_s9, %s1200_s9 }
  0x11   :  { %p1207_p8 = por %p1206_p7, %p1205_p6 }
  0x13   :  { %p1208_p9 = pnand %p1207_p8, %p1201_p5 }
  0x15   :  { %1211 = shalt.err (!%p1208_p9)
}
  0x16   :  { %s1269_s2 = smov [#allocation7]   ;;  %s24_s11 = sshll.u32 %s1898_s1, 4  ;;  %s25_s11 = int_to_ptr.vmem [resolvable:$true] %s24_s11 }
  0x17   :  { %57 = dma.vmem_to_smem %s55_s29, 16, %s1269_s2, [#allocation8]  }
  0x18   :  { %s44_s14 = sshll.u32 %s1900_s3, 4  ;;  %s1212_s15 = scalar_lea.vmem %s25_s11, 64  ;;  %s45_s14 = int_to_ptr.vmem [resolvable:$true] %s44_s14 }
  0x19   :  { %p1213_p10 = scmp.ne.s32.totalorder %s25_s11, %s1212_s15  ;;  %p1217_p11 = scmp.lt.s32.totalorder %s25_s11, %s25_s11 }
  0x1a   :  { %p1218_p12 = scmp.lt.s32.totalorder %s1212_s15, %s1212_s15 }
  0x1c   :  { %p1219_p13 = por %p1218_p12, %p1217_p11 }
  0x1e   :  { %p1220_p0 = pnand %p1219_p13, %p1213_p10 }
  0x20   :  { %1223 = shalt.err (!%p1220_p0)
}
  0x21   :  { %s1270_s16 = smov [#allocation2]   ;;  %s1224_s17 = scalar_lea.vmem %s45_s14, 64 }
  0x22   :  { %27 = dma.vmem_to_smem %s25_s11, 64, %s1270_s16, [#allocation3]  }
  0x23   :  { %p1225_p1 = scmp.ne.s32.totalorder %s45_s14, %s1224_s17  ;;  %p1229_p2 = scmp.lt.s32.totalorder %s45_s14, %s45_s14 }
  0x24   :  { %p1230_p3 = scmp.lt.s32.totalorder %s1224_s17, %s1224_s17 }
  0x26   :  { %p1231_p4 = por %p1230_p3, %p1229_p2 }
  0x28   :  { %p1232_p5 = pnand %p1231_p4, %p1225_p1 }
  0x2a   :  { %1235 = shalt.err (!%p1232_p5)
}
  0x2b   :  { %s1271_s1 = smov [#allocation6]   ;;  %s64_s19 = sshll.u32 %s1902_s5, 4  ;;  %s65_s19 = int_to_ptr.vmem [resolvable:$true] %s64_s19 }
  0x2c   :  { %47 = dma.vmem_to_smem %s45_s14, 64, %s1271_s1, [#allocation5]  }
  0x2d   :  { %s74_s22 = sshll.u32 %s1903_s6, 4  ;;  %s1236_s23 = scalar_lea.vmem %s65_s19, 64  ;;  %s75_s22 = int_to_ptr.vmem [resolvable:$true] %s74_s22 }
  0x2e   :  { %p1237_p6 = scmp.ne.s32.totalorder %s65_s19, %s1236_s23  ;;  %p1241_p7 = scmp.lt.s32.totalorder %s65_s19, %s65_s19 }
  0x2f   :  { %p1242_p8 = scmp.lt.s32.totalorder %s1236_s23, %s1236_s23 }
  0x31   :  { %p1243_p9 = por %p1242_p8, %p1241_p7 }
  0x33   :  { %p1244_p10 = pnand %p1243_p9, %p1237_p6 }
  0x35   :  { %1247 = shalt.err (!%p1244_p10)
}
  0x36   :  { %s1272_s24 = smov [#allocation9]   ;;  %s1248_s25 = scalar_lea.vmem %s75_s22, 16 }
  0x37   :  { %67 = dma.vmem_to_smem %s65_s19, 64, %s1272_s24, [#allocation8]  }
  0x38   :  { %p1249_p11 = scmp.ne.s32.totalorder %s75_s22, %s1248_s25  ;;  %p1253_p12 = scmp.lt.s32.totalorder %s75_s22, %s75_s22 }
  0x39   :  { %p1254_p13 = scmp.lt.s32.totalorder %s1248_s25, %s1248_s25 }
  0x3b   :  { %p1255_p0 = por %p1254_p13, %p1253_p12 }
  0x3d   :  { %p1256_p1 = pnand %p1255_p0, %p1249_p11 }
  0x3f   :  { %1259 = shalt.err (!%p1256_p1)
}
  0x40   :  { %s1273_s5 = smov [#allocation10]  }
  0x41   :  { %77 = dma.vmem_to_smem %s75_s22, 16, %s1273_s5, [#allocation11]  }
  0x42   :  { %1260 = dma.done.wait [#allocation3], 64  }
  0x43   :  { %1261 = vsyncadd [#allocation3], 4294967232 }
  0x44   :  { %1262 = dma.done.wait [#allocation5], 80  }
  0x45   :  { %1263 = vsyncadd [#allocation5], 4294967216 }
  0x46   :  { %1264 = dma.done.wait [#allocation8], 80  }
  0x47   :  { %1265 = vsyncadd [#allocation8], 4294967216 }
  0x48   :  { %1266 = dma.done.wait [#allocation11], 16  }
  0x49   :  { %1267 = vsyncadd [#allocation11], 4294967280 }
  0x4a   :  { %96 = sfence }
  0x4b   :  { %s99_s6 = sld [smem:[#allocation2]]  ;;  %v1337_v0 = vld [vmem:[%s1897_s0] sm:$0xff]  ;;  %v1342_v1 = vld [vmem:[%s1897_s0 + $0x8] sm:$0xff]  ;;  %vm109_vm0 = vcmask 1046528   ;;  %vm123_vm1 = vcmask 1045504   ;;  %vm159_vm2 = vcmask 1040384  }
  0x4c   :  { %s1068_s26 = sld [smem:[#allocation2 + $0x1]]  ;;  %vm161_vm3 = vcmask 1041408   ;;  %vm163_vm4 = vcmask 1042432   ;;  %vm165_vm5 = vcmask 1043456   ;;  %vm167_vm6 = vcmask 1044480  }
  0x4d   :  { %s1069_s27 = sld [smem:[#allocation2 + $0x2]]  ;;  %vm1058_vm7 = vcmask 11264  }
  0x4e   :  { %s1332_s28 = sld [smem:[#allocation4]] }
  0x4f   :  { %s1070_s29 = sld [smem:[#allocation2 + $0x80]] }
  0x50   :  { %s1344_s4 = sld [smem:[#allocation2 + $0x81]] }
  0x51   :  { %v100_v2 = vstv %s99_s6  ;;  %s1346_s10 = sld [smem:[#allocation2 + $0x82]] }
  0x52   :  { %v104_v3 = vstv %s1068_s26  ;;  %s1348_s11 = sld [smem:[#allocation4 + $0x1]]  ;;  %v102_v4 = vmul.f32 %v100_v2, %v1342_v1  ;;  %v101_v8 = vmul.f32 %v100_v2, %v1337_v0 }
  0x53   :  { %v105_v5 = vmul.f32 %v104_v3, %v1337_v0  ;;  %v106_v6 = vmul.f32 %v104_v3, %v1342_v1  ;;  %v118_v7 = vstv %s1069_s27  ;;  %s1353_s12 = sld [smem:[#allocation2 + $0x100]] }
  0x54   :  { %v119_v9 = vmul.f32 %v118_v7, %v1337_v0  ;;  %v120_v10 = vmul.f32 %v118_v7, %v1342_v1  ;;  %v132_v13 = vstv %s1332_s28  ;;  %s1359_s0 = sld [smem:[#allocation2 + $0x101]] }
  0x55   :  { %v110_v11 = vrot.slane %v105_v5, 1  ;;  %v111_v12 = vrot.slane %v106_v6, 1  ;;  %v172_v14 = vstv %s1070_s29  ;;  %s1363_s13 = sld [smem:[#allocation2 + $0x102]] }
  0x56   :  { %v124_v15 = vrot.slane %v119_v9, 2  ;;  %v125_v16 = vrot.slane %v120_v10, 2  ;;  %v173_v17 = vmul.f32 %v172_v14, %v1337_v0  ;;  %v174_v18 = vmul.f32 %v172_v14, %v1342_v1  ;;  %s1368_s14 = sld [smem:[#allocation4 + $0x2]] }
  0x57   :  { %v112_v19 = vsel %vm109_vm0, %v110_v11, %v111_v12  ;;  %v116_v20 = vadd.f32 %v111_v12, %v102_v4  ;;  %v176_v21 = vstv %s1344_s4  ;;  %v189_v22 = vstv %s1346_s10  ;;  %s1382_s15 = sld [smem:[#allocation2 + $0x180]] }
  0x58   :  { %v115_v23 = vadd.f32 %v112_v19, %v101_v8  ;;  %v126_v24 = vsel %vm123_vm1, %v124_v15, %v125_v16  ;;  %v177_v25 = vmul.f32 %v176_v21, %v1337_v0  ;;  %v178_v26 = vmul.f32 %v176_v21, %v1342_v1  ;;  %s1386_s16 = sld [smem:[#allocation2 + $0x181]] }
  0x59   :  { %v130_v27 = vadd.f32 %v125_v16, %v116_v20  ;;  %v190_v28 = vmul.f32 %v189_v22, %v1337_v0  ;;  %v191_v29 = vmul.f32 %v189_v22, %v1342_v1  ;;  %v202_v30 = vstv %s1348_s11  ;;  %s1393_s17 = sld [smem:[#allocation2 + $0x182]] }
  0x5a   :  { %v129_v31 = vadd.f32 %v126_v24, %v115_v23  ;;  %v181_v32 = vrot.slane %v177_v25, 1  ;;  %v182_v33 = vrot.slane %v178_v26, 1  ;;  %v237_v34 = vstv %s1353_s12  ;;  %s1400_s1 = sld [smem:[#allocation4 + $0x3]] }
  0x5b   :  { %v134_v35 = vadd.f32 %v132_v13, %v130_v27  ;;  %v194_v36 = vrot.slane %v190_v28, 2  ;;  %v195_v37 = vrot.slane %v191_v29, 2  ;;  %v238_v38 = vmul.f32 %v237_v34, %v1337_v0  ;;  %s1410_s3 = sld [smem:[#allocation6]] }
  0x5c   :  { %v133_v39 = vadd.f32 %v132_v13, %v129_v31  ;;  %v183_v40 = vsel %vm109_vm0, %v181_v32, %v182_v33  ;;  %v187_v41 = vadd.f32 %v182_v33, %v174_v18  ;;  %v239_v42 = vmul.f32 %v237_v34, %v1342_v1  ;;  %s1416_s18 = sld [smem:[#allocation6 + $0x1]] }
  0x5d   :  { %v136_v43 = vmax.f32 %v134_v35, 0.0  ;;  %v186_v44 = vadd.f32 %v183_v40, %v173_v17  ;;  %v196_v45 = vsel %vm123_vm1, %v194_v36, %v195_v37  ;;  %v241_v46 = vstv %s1359_s0  ;;  %s1421_s19 = sld [smem:[#allocation6 + $0x2]] }
  0x5e   :  { %v135_v47 = vmax.f32 %v133_v39, 0.0  ;;  %v200_v48 = vadd.f32 %v195_v37, %v187_v41  ;;  %v242_v49 = vmul.f32 %v241_v46, %v1337_v0  ;;  %v243_v50 = vmul.f32 %v241_v46, %v1342_v1  ;;  %s1428_s20 = sld [smem:[#allocation6 + $0x3]] }
  0x5f   :  { %v142_v51 = vrot.slane %v136_v43, 1  ;;  %v199_v52 = vadd.f32 %v196_v45, %v186_v44  ;;  %v254_v53 = vstv %s1363_s13  ;;  %v267_v54 = vstv %s1368_s14  ;;  %s1435_s21 = sld [smem:[#allocation6 + $0x4]] }
  0x60   :  { %v138_v55 = vrot.slane %v135_v47, 1  ;;  %v204_v56 = vadd.f32 %v202_v30, %v200_v48  ;;  %v246_v57 = vrot.slane %v242_v49, 1  ;;  %v247_v58 = vrot.slane %v243_v50, 1  ;;  %s1440_s22 = sld [smem:[#allocation6 + $0x5]] }
  0x61   :  { %v144_v59 = vmax.f32 %v136_v43, %v142_v51  ;;  %v203_v60 = vadd.f32 %v202_v30, %v199_v52  ;;  %v255_v61 = vmul.f32 %v254_v53, %v1337_v0  ;;  %v256_v62 = vmul.f32 %v254_v53, %v1342_v1  ;;  %s1444_s23 = sld [smem:[#allocation6 + $0x6]] }
  0x62   :  { %v140_v63 = vmax.f32 %v135_v47, %v138_v55  ;;  %v206_v2 = vmax.f32 %v204_v56, 0.0  ;;  %v248_v3 = vsel %vm109_vm0, %v246_v57, %v247_v58  ;;  %v252_v4 = vadd.f32 %v247_v58, %v239_v42  ;;  %s1452_s24 = sld [smem:[#allocation6 + $0x7]] }
  0x63   :  { %v153_v5 = vrot.slane %v144_v59, 3  ;;  %v155_v6 = vrot.slane %v144_v59, 4  ;;  %v157_v7 = vrot.slane %v144_v59, 5  ;;  %v205_v8 = vmax.f32 %v203_v60, 0.0  ;;  %s1456_s25 = sld [smem:[#allocation6 + $0x8]] }
  0x64   :  { %v146_v9 = vrot.slane %v140_v63, 7  ;;  %v148_v10 = vrot.slane %v140_v63, 1  ;;  %v150_v11 = vrot.slane %v140_v63, 2  ;;  %v212_v12 = vrot.slane %v206_v2, 1  ;;  %s1461_s5 = sld [smem:[#allocation6 + $0x9]] }
  0x65   :  { %v208_v13 = vrot.slane %v205_v8, 1  ;;  %v251_v14 = vadd.f32 %v248_v3, %v238_v38  ;;  %v259_v15 = vrot.slane %v255_v61, 2  ;;  %v260_v16 = vrot.slane %v256_v62, 2  ;;  %s1465_s6 = sld [smem:[#allocation6 + $0xa]] }
  0x66   :  { %v160_v17 = vsel %vm159_vm2, 0.0, %v146_v9  ;;  %v214_v18 = vmax.f32 %v206_v2, %v212_v12  ;;  %v302_v19 = vstv %s1382_s15  ;;  %v306_v20 = vstv %s1386_s16  ;;  %s1471_s26 = sld [smem:[#allocation6 + $0xb]] }
  0x67   :  { %v162_v21 = vsel %vm161_vm3, %v160_v17, %v140_v63  ;;  %v210_v22 = vmax.f32 %v205_v8, %v208_v13  ;;  %v261_v23 = vsel %vm123_vm1, %v259_v15, %v260_v16  ;;  %v265_v24 = vadd.f32 %v260_v16, %v252_v4  ;;  %s1474_s27 = sld [smem:[#allocation6 + $0x80]] }
  0x68   :  { %v164_v25 = vsel %vm163_vm4, %v162_v21, %v148_v10  ;;  %v223_v26 = vrot.slane %v214_v18, 3  ;;  %v225_v27 = vrot.slane %v214_v18, 4  ;;  %v227_v28 = vrot.slane %v214_v18, 5  ;;  %s1477_s28 = sld [smem:[#allocation6 + $0x81]] }
  0x69   :  { %v166_v29 = vsel %vm165_vm5, %v164_v25, %v150_v11  ;;  %v216_v30 = vrot.slane %v210_v22, 7  ;;  %v218_v31 = vrot.slane %v210_v22, 1  ;;  %v220_v32 = vrot.slane %v210_v22, 2  ;;  %s1479_s29 = sld [smem:[#allocation6 + $0x82]] }
  0x6a   :  { %v168_v33 = vsel %vm167_vm6, %v166_v29, %v153_v5  ;;  %v264_v34 = vadd.f32 %v261_v23, %v251_v14  ;;  %v269_v35 = vadd.f32 %v267_v54, %v265_v24  ;;  %v303_v36 = vmul.f32 %v302_v19, %v1337_v0  ;;  %s1482_s30 = sld [smem:[#allocation6 + $0x83]] }
  0x6b   :  { %v169_v37 = vsel %vm123_vm1, %v168_v33, %v155_v6  ;;  %v229_v38 = vsel %vm159_vm2, 0.0, %v216_v30  ;;  %v304_v39 = vmul.f32 %v302_v19, %v1342_v1  ;;  %v307_v40 = vmul.f32 %v306_v20, %v1337_v0  ;;  %s1488_s8 = sld [smem:[#allocation6 + $0x84]] }
  0x6c   :  { %v1413_v41 = vsel %vm109_vm0, %v169_v37, %v157_v7  ;;  %v230_v42 = vsel %vm161_vm3, %v229_v38, %v210_v22  ;;  %v268_v43 = vadd.f32 %v267_v54, %v264_v34  ;;  %v271_v44 = vmax.f32 %v269_v35, 0.0  ;;  %s1495_s9 = sld [smem:[#allocation7]] }
  0x6d   :  { %v231_v45 = vsel %vm163_vm4, %v230_v42, %v218_v31  ;;  %v308_v46 = vmul.f32 %v306_v20, %v1342_v1  ;;  %v311_v47 = vrot.slane %v307_v40, 1  ;;  %v319_v48 = vstv %s1393_s17  ;;  %s1499_s2 = sld [smem:[#allocation6 + $0x85]] }
  0x6e   :  { %v232_v49 = vsel %vm165_vm5, %v231_v45, %v220_v32  ;;  %v270_v50 = vmax.f32 %v268_v43, 0.0  ;;  %v277_v51 = vrot.slane %v271_v44, 1  ;;  %v320_v52 = vmul.f32 %v319_v48, %v1337_v0  ;;  %s1503_s4 = sld [smem:[#allocation6 + $0x87]] }
  0x6f   :  { %v233_v53 = vsel %vm167_vm6, %v232_v49, %v223_v26  ;;  %v312_v54 = vrot.slane %v308_v46, 1  ;;  %v321_v55 = vmul.f32 %v319_v48, %v1342_v1  ;;  %v332_v56 = vstv %s1400_s1  ;;  %s1509_s10 = sld [smem:[#allocation6 + $0x88]] }
  0x70   :  { %v234_v57 = vsel %vm123_vm1, %v233_v53, %v225_v27  ;;  %v273_v58 = vrot.slane %v270_v50, 1  ;;  %v279_v59 = vmax.f32 %v271_v44, %v277_v51  ;;  %v324_v60 = vrot.slane %v320_v52, 2  ;;  %s1515_s11 = sld [smem:[#allocation6 + $0x86]] }
  0x71   :  { %v1432_v61 = vsel %vm109_vm0, %v234_v57, %v227_v28  ;;  %v313_v62 = vsel %vm109_vm0, %v311_v47, %v312_v54  ;;  %v317_v0 = vadd.f32 %v312_v54, %v304_v39  ;;  %v325_v63 = vrot.slane %v321_v55, 2  ;;  %s1524_s12 = sld [smem:[#allocation6 + $0x89]] }
  0x72   :  { %v275_v2 = vmax.f32 %v270_v50, %v273_v58  ;;  %v288_v3 = vrot.slane %v279_v59, 3  ;;  %v290_v1 = vrot.slane %v279_v59, 4  ;;  %v292_v4 = vrot.slane %v279_v59, 5  ;;  %s1527_s0 = sld [smem:[#allocation6 + $0x8a]] }
  0x73   :  { %v316_v5 = vadd.f32 %v313_v62, %v303_v36  ;;  %v326_v6 = vsel %vm123_vm1, %v324_v60, %v325_v63  ;;  %v330_v7 = vadd.f32 %v325_v63, %v317_v0  ;;  %v367_v8 = vstv %s1410_s3  ;;  %s1531_s13 = sld [smem:[#allocation6 + $0x8b]] }
  0x74   :  { %v281_v9 = vrot.slane %v275_v2, 7  ;;  %v283_v10 = vrot.slane %v275_v2, 1  ;;  %v285_v11 = vrot.slane %v275_v2, 2  ;;  %v368_v12 = vmul.f32 %v367_v8, %v1413_v41  ;;  %s1535_s14 = sld [smem:[#allocation6 + $0x100]] }
  0x75   :  { %v329_v13 = vadd.f32 %v326_v6, %v316_v5  ;;  %v334_v14 = vadd.f32 %v332_v56, %v330_v7  ;;  %v370_v15 = vstv %s1416_s18  ;;  %v377_v16 = vstv %s1421_s19  ;;  %s1539_s15 = sld [smem:[#allocation6 + $0x101]] }
  0x76   :  { %v294_v17 = vsel %vm159_vm2, 0.0, %v281_v9  ;;  %v371_v18 = vmul.f32 %v370_v15, %v1413_v41  ;;  %v378_v19 = vmul.f32 %v377_v16, %v1413_v41  ;;  %v379_v20 = vmul.f32 0.0, %v377_v16  ;;  %s1543_s16 = sld [smem:[#allocation6 + $0x102]] }
  0x77   :  { %v295_v21 = vsel %vm161_vm3, %v294_v17, %v275_v2  ;;  %v333_v22 = vadd.f32 %v332_v56, %v329_v13  ;;  %v336_v23 = vmax.f32 %v334_v14, 0.0  ;;  %v388_v24 = vstv %s1428_s20  ;;  %s1547_s17 = sld [smem:[#allocation6 + $0x103]] }
  0x78   :  { %v296_v25 = vsel %vm163_vm4, %v295_v21, %v283_v10  ;;  %v373_v26 = vrot.slane %v371_v18, 1  ;;  %v382_v27 = vrot.slane %v378_v19, 2  ;;  %v383_v28 = vrot.slane %v379_v20, 2  ;;  %s1551_s1 = sld [smem:[#allocation6 + $0x104]] }
  0x79   :  { %v297_v29 = vsel %vm165_vm5, %v296_v25, %v285_v11  ;;  %v335_v30 = vmax.f32 %v333_v22, 0.0  ;;  %v342_v31 = vrot.slane %v336_v23, 1  ;;  %v389_v32 = vmul.f32 %v388_v24, %v1432_v61  ;;  %s1555_s3 = sld [smem:[#allocation6 + $0x105]] }
  0x7a   :  { %v298_v33 = vsel %vm167_vm6, %v297_v29, %v288_v3  ;;  %v375_v34 = vadd.f32 %v373_v26, %v368_v12  ;;  %v384_v35 = vsel %vm123_vm1, %v382_v27, %v383_v28  ;;  %v392_v36 = vstv %s1435_s21  ;;  %s1563_s18 = sld [smem:[#allocation6 + $0x106]] }
  0x7b   :  { %v299_v37 = vsel %vm123_vm1, %v298_v33, %v290_v1  ;;  %v338_v38 = vrot.slane %v335_v30, 1  ;;  %v344_v39 = vmax.f32 %v336_v23, %v342_v31  ;;  %v393_v40 = vmul.f32 %v392_v36, %v1432_v61  ;;  %s1569_s19 = sld [smem:[#allocation6 + $0x107]] }
  0x7c   :  { %v1468_v42 = vsel %vm109_vm0, %v299_v37, %v292_v4  ;;  %v386_v43 = vadd.f32 %v384_v35, %v375_v34  ;;  %v399_v44 = vstv %s1440_s22  ;;  %v410_v48 = vstv %s1444_s23  ;;  %s1573_s20 = sld [smem:[#allocation6 + $0x108]] }
  0x7d   :  { %v340_v45 = vmax.f32 %v335_v30, %v338_v38  ;;  %v353_v46 = vrot.slane %v344_v39, 3  ;;  %v355_v47 = vrot.slane %v344_v39, 4  ;;  %v395_v50 = vrot.slane %v393_v40, 1  ;;  %s1575_s21 = sld [smem:[#allocation7 + $0x1]] }
  0x7e   :  { %v390_v49 = vadd.f32 %v389_v32, %v386_v43  ;;  %v400_v51 = vmul.f32 %v399_v44, %v1432_v61  ;;  %v401_v52 = vmul.f32 0.0, %v399_v44  ;;  %v357_v56 = vrot.slane %v344_v39, 5  ;;  %s1581_s22 = sld [smem:[#allocation6 + $0x10a]] }
  0x7f   :  { %v346_v53 = vrot.slane %v340_v45, 7  ;;  %v348_v54 = vrot.slane %v340_v45, 1  ;;  %v350_v55 = vrot.slane %v340_v45, 2  ;;  %v414_v60 = vstv %s1452_s24  ;;  %s1586_s23 = sld [smem:[#allocation6 + $0x109]] }
  0x80   :  { %v397_v57 = vadd.f32 %v395_v50, %v390_v49  ;;  %v404_v58 = vrot.slane %v400_v51, 2  ;;  %v405_v59 = vrot.slane %v401_v52, 2  ;;  %v411_v0 = vmul.f32 %v410_v48, %v1468_v42  ;;  %s1588_s24 = sld [smem:[#allocation6 + $0x10b]] }
  0x81   :  { %v359_v62 = vsel %vm159_vm2, 0.0, %v346_v53  ;;  %v415_v63 = vmul.f32 %v414_v60, %v1468_v42  ;;  %v421_v2 = vstv %s1456_s25  ;;  %v432_v9 = vstv %s1461_s5  ;;  %s1593_s25 = sld [smem:[#allocation7 + $0x2]] }
  0x82   :  { %v360_v3 = vsel %vm161_vm3, %v359_v62, %v340_v45  ;;  %v406_v1 = vsel %vm123_vm1, %v404_v58, %v405_v59  ;;  %v422_v4 = vmul.f32 %v421_v2, %v1468_v42  ;;  %v423_v5 = vmul.f32 0.0, %v421_v2  ;;  %s1597_s5 = sld [smem:[#allocation6 + $0x180]] }
  0x83   :  { %v361_v6 = vsel %vm163_vm4, %v360_v3, %v348_v54  ;;  %v408_v7 = vadd.f32 %v406_v1, %v397_v57  ;;  %v417_v8 = vrot.slane %v415_v63, 1  ;;  %v443_v13 = vstv %s1471_s26  ;;  %s1604_s26 = sld [smem:[#allocation6 + $0x182]] }
  0x84   :  { %v362_v10 = vsel %vm165_vm5, %v361_v6, %v350_v55  ;;  %v426_v11 = vrot.slane %v422_v4, 2  ;;  %v427_v12 = vrot.slane %v423_v5, 2  ;;  %v436_v16 = vstv %s1465_s6  ;;  %s1600_s6 = sld [smem:[#allocation6 + $0x181]] }
  0x85   :  { %v363_v14 = vsel %vm167_vm6, %v362_v10, %v353_v46  ;;  %v412_v15 = vadd.f32 %v411_v0, %v408_v7  ;;  %v445_v17 = vmul.f32 0.0, %v443_v13  ;;  %v462_v20 = vstv %s1474_s27  ;;  %s1608_s27 = sld [smem:[#allocation6 + $0x183]] }
  0x86   :  { %v364_v18 = vsel %vm123_vm1, %v363_v14, %v355_v47  ;;  %v428_v19 = vsel %vm123_vm1, %v426_v11, %v427_v12  ;;  %v465_v21 = vstv %s1477_s28  ;;  %v463_v25 = vmul.f32 %v462_v20, %v1413_v41  ;;  %s1613_s28 = sld [smem:[#allocation6 + $0x184]] }
  0x87   :  { %v1512_v22 = vsel %vm109_vm0, %v364_v18, %v357_v56  ;;  %v419_v23 = vadd.f32 %v417_v8, %v412_v15  ;;  %v449_v24 = vrot.slane %v445_v17, 2  ;;  %v466_v29 = vmul.f32 %v465_v21, %v1413_v41 }
  0x88   :  { %v433_v26 = vmul.f32 %v432_v9, %v1512_v22  ;;  %v437_v27 = vmul.f32 %v436_v16, %v1512_v22  ;;  %v444_v28 = vmul.f32 %v443_v13, %v1512_v22  ;;  %v472_v31 = vstv %s1479_s29  ;;  %s1616_s29 = sld [smem:[#allocation6 + $0x185]] }
  0x89   :  { %v430_v30 = vadd.f32 %v428_v19, %v419_v23  ;;  %v483_v32 = vstv %s1482_s30  ;;  %v487_v33 = vstv %s1488_s8  ;;  %v468_v36 = vrot.slane %v466_v29, 1  ;;  %s1621_s30 = sld [smem:[#allocation6 + $0x186]] }
  0x8a   :  { %v439_v34 = vrot.slane %v437_v27, 1  ;;  %v448_v35 = vrot.slane %v444_v28, 2  ;;  %v473_v37 = vmul.f32 %v472_v31, %v1413_v41  ;;  %v454_v39 = vstv %s1495_s9  ;;  %s1627_s8 = sld [smem:[#allocation6 + $0x187]] }
  0x8b   :  { %v434_v38 = vadd.f32 %v433_v26, %v430_v30  ;;  %v474_v40 = vmul.f32 0.0, %v472_v31  ;;  %v488_v43 = vmul.f32 %v487_v33, %v1432_v61  ;;  %v470_v45 = vadd.f32 %v468_v36, %v463_v25  ;;  %s1632_s9 = sld [smem:[#allocation6 + $0x188]] }
  0x8c   :  { %v450_v44 = vsel %vm123_vm1, %v448_v35, %v449_v24  ;;  %v477_v46 = vrot.slane %v473_v37, 2  ;;  %v494_v47 = vstv %s1499_s2  ;;  %v484_v50 = vmul.f32 %v483_v32, %v1432_v61  ;;  %s1637_s2 = sld [smem:[#allocation6 + $0x189]] }
  0x8d   :  { %v441_v48 = vadd.f32 %v439_v34, %v434_v38  ;;  %v478_v49 = vrot.slane %v474_v40, 2  ;;  %v495_v51 = vmul.f32 %v494_v47, %v1432_v61  ;;  %v490_v52 = vrot.slane %v488_v43, 1 }
  0x8e   :  { %v496_v53 = vmul.f32 0.0, %v494_v47  ;;  %v509_v54 = vstv %s1503_s4  ;;  %v516_v55 = vstv %s1509_s10  ;;  %v505_v59 = vstv %s1515_s11  ;;  %s1643_s4 = sld [smem:[#allocation6 + $0x18a]] }
  0x8f   :  { %v452_v56 = vadd.f32 %v450_v44, %v441_v48  ;;  %v479_v57 = vsel %vm123_vm1, %v477_v46, %v478_v49  ;;  %v499_v58 = vrot.slane %v495_v51, 2  ;;  %v510_v0 = vmul.f32 %v509_v54, %v1468_v42  ;;  %s1648_s10 = sld [smem:[#allocation6 + $0x18b]] }
  0x90   :  { %v481_v60 = vadd.f32 %v479_v57, %v470_v45  ;;  %v500_v62 = vrot.slane %v496_v53, 2  ;;  %v517_v63 = vmul.f32 %v516_v55, %v1468_v42  ;;  %v518_v3 = vmul.f32 0.0, %v516_v55  ;;  %s1651_s11 = sld [smem:[#allocation7 + $0x3]] }
  0x91   :  { %v1553_v2 = vadd.f32 %v454_v39, %v452_v56  ;;  %v527_v5 = vstv %s1524_s12  ;;  %v531_v6 = vstv %s1527_s0  ;;  %v506_v8 = vmul.f32 %v505_v59, %v1468_v42  ;;  %s1654_s12 = sld [smem:[#allocation9]] }
  0x92   :  { %v485_v1 = vadd.f32 %v484_v50, %v481_v60  ;;  %v521_v4 = vrot.slane %v517_v63, 2  ;;  %v501_v7 = vsel %vm123_vm1, %v499_v58, %v500_v62  ;;  %v522_v9 = vrot.slane %v518_v3, 2  ;;  %s1659_s0 = sld [smem:[#allocation9 + $0x1]] }
  0x93   :  { %v512_v11 = vrot.slane %v510_v0, 1  ;;  %v538_v12 = vstv %s1531_s13  ;;  %v557_v13 = vstv %s1535_s14  ;;  %v456_v14 = vmax.f32 %v1553_v2, 0.0  ;;  %s1663_s13 = sld [smem:[#allocation9 + $0x2]] }
  0x94   :  { %v492_v10 = vadd.f32 %v490_v52, %v485_v1  ;;  %v528_v15 = vmul.f32 %v527_v5, %v1512_v22  ;;  %v532_v16 = vmul.f32 %v531_v6, %v1512_v22  ;;  %v539_v17 = vmul.f32 %v538_v12, %v1512_v22  ;;  %s1668_s14 = sld [smem:[#allocation9 + $0x3]] }
  0x95   :  { %v523_v19 = vsel %vm123_vm1, %v521_v4, %v522_v9  ;;  %v540_v20 = vmul.f32 0.0, %v538_v12  ;;  %v560_v21 = vstv %s1539_s15  ;;  %v558_v24 = vmul.f32 %v557_v13, %v1413_v41  ;;  %s1670_s15 = sld [smem:[#allocation9 + $0x4]] }
  0x96   :  { %v503_v18 = vadd.f32 %v501_v7, %v492_v10  ;;  %v543_v23 = vrot.slane %v539_v17, 2  ;;  %v561_v25 = vmul.f32 %v560_v21, %v1413_v41  ;;  %v567_v26 = vstv %s1543_s16  ;;  %s1674_s16 = sld [smem:[#allocation9 + $0x5]] }
  0x97   :  { %v544_v28 = vrot.slane %v540_v20, 2  ;;  %v568_v29 = vmul.f32 %v567_v26, %v1413_v41  ;;  %v569_v30 = vmul.f32 0.0, %v567_v26  ;;  %v578_v32 = vstv %s1547_s17  ;;  %s1678_s17 = sld [smem:[#allocation9 + $0x6]] }
  0x98   :  { %v507_v27 = vadd.f32 %v506_v8, %v503_v18  ;;  %v563_v31 = vrot.slane %v561_v25, 1  ;;  %v582_v33 = vstv %s1551_s1  ;;  %v589_v34 = vstv %s1555_s3  ;;  %s1683_s1 = sld [smem:[#allocation9 + $0x7]] }
  0x99   :  { %v534_v36 = vrot.slane %v532_v16, 1  ;;  %v572_v37 = vrot.slane %v568_v29, 2  ;;  %v573_v38 = vrot.slane %v569_v30, 2  ;;  %v579_v40 = vmul.f32 %v578_v32, %v1432_v61  ;;  %s1686_s3 = sld [smem:[#allocation9 + $0x8]] }
  0x9a   :  { %v514_v35 = vadd.f32 %v512_v11, %v507_v27  ;;  %v565_v39 = vadd.f32 %v563_v31, %v558_v24  ;;  %v583_v43 = vmul.f32 %v582_v33, %v1432_v61  ;;  %v590_v44 = vmul.f32 %v589_v34, %v1432_v61 }
  0x9b   :  { %v545_v46 = vsel %vm123_vm1, %v543_v23, %v544_v28  ;;  %v574_v47 = vsel %vm123_vm1, %v572_v37, %v573_v38  ;;  %v591_v48 = vmul.f32 0.0, %v589_v34  ;;  %v600_v52 = vstv %s1563_s18  ;;  %s1694_s18 = sld [smem:[#allocation9 + $0x9]] }
  0x9c   :  { %v525_v45 = vadd.f32 %v523_v19, %v514_v35  ;;  %v576_v49 = vadd.f32 %v574_v47, %v565_v39  ;;  %v585_v50 = vrot.slane %v583_v43, 1  ;;  %v594_v51 = vrot.slane %v590_v44, 2 }
  0x9d   :  { %v595_v54 = vrot.slane %v591_v48, 2  ;;  %v604_v55 = vstv %s1569_s19  ;;  %v611_v56 = vstv %s1573_s20  ;;  %v601_v63 = vmul.f32 %v600_v52, %v1468_v42  ;;  %s1697_s19 = sld [smem:[#allocation9 + $0xa]] }
  0x9e   :  { %v529_v53 = vadd.f32 %v528_v15, %v525_v45  ;;  %v580_v57 = vadd.f32 %v579_v40, %v576_v49  ;;  %v605_v58 = vmul.f32 %v604_v55, %v1468_v42  ;;  %v612_v59 = vmul.f32 %v611_v56, %v1468_v42  ;;  %s1703_s20 = sld [smem:[#allocation9 + $0x80]] }
  0x9f   :  { %v613_v60 = vmul.f32 0.0, %v611_v56  ;;  %v596_v0 = vsel %vm123_vm1, %v594_v51, %v595_v54  ;;  %v626_v3 = vstv %s1581_s22  ;;  %v622_v6 = vstv %s1586_s23  ;;  %s1713_s22 = sld [smem:[#allocation9 + $0x82]] }
  0xa0   :  { %v536_v62 = vadd.f32 %v534_v36, %v529_v53  ;;  %v587_v1 = vadd.f32 %v585_v50, %v580_v57  ;;  %v616_v4 = vrot.slane %v612_v59, 2  ;;  %v549_v8 = vstv %s1575_s21  ;;  %s1708_s21 = sld [smem:[#allocation9 + $0x81]] }
  0xa1   :  { %v617_v5 = vrot.slane %v613_v60, 2  ;;  %v627_v9 = vmul.f32 %v626_v3, %v1512_v22  ;;  %v633_v10 = vstv %s1588_s24  ;;  %v1625_v11 = vrot.slane %v456_v14, 1  ;;  %s1717_s23 = sld [smem:[#allocation9 + $0x83]] }
  0xa2   :  { %v547_v7 = vadd.f32 %v545_v46, %v536_v62  ;;  %v598_v12 = vadd.f32 %v596_v0, %v587_v1  ;;  %v607_v13 = vrot.slane %v605_v58, 1  ;;  %v623_v15 = vmul.f32 %v622_v6, %v1512_v22  ;;  %s1721_s24 = sld [smem:[#allocation9 + $0x84]] }
  0xa3   :  { %v634_v16 = vmul.f32 %v633_v10, %v1512_v22  ;;  %v635_v17 = vmul.f32 0.0, %v633_v10  ;;  %v652_v18 = vstv %s1597_s5  ;;  %v618_v21 = vsel %vm123_vm1, %v616_v4, %v617_v5  ;;  %s1727_s5 = sld [smem:[#allocation9 + $0xb]] }
  0xa4   :  { %v1634_v19 = vadd.f32 %v549_v8, %v547_v7  ;;  %v602_v20 = vadd.f32 %v601_v63, %v598_v12  ;;  %v629_v23 = vrot.slane %v627_v9, 1  ;;  %v644_v24 = vstv %s1593_s25  ;;  %s1723_s25 = sld [smem:[#allocation9 + $0x85]] }
  0xa5   :  { %v653_v25 = vmul.f32 %v652_v18, %v1413_v41  ;;  %v655_v26 = vstv %s1600_s6  ;;  %v662_v27 = vstv %s1604_s26  ;;  %v673_v31 = vstv %s1608_s27  ;;  %s1729_s6 = sld [smem:[#allocation9 + $0x86]] }
  0xa6   :  { %v609_v28 = vadd.f32 %v607_v13, %v602_v20  ;;  %v656_v29 = vmul.f32 %v655_v26, %v1413_v41  ;;  %v663_v30 = vmul.f32 %v662_v27, %v1413_v41  ;;  %v638_v32 = vrot.slane %v634_v16, 2  ;;  %s1733_s26 = sld [smem:[#allocation9 + $0x87]] }
  0xa7   :  { %v639_v33 = vrot.slane %v635_v17, 2  ;;  %v664_v34 = vmul.f32 0.0, %v662_v27  ;;  %v677_v35 = vstv %s1613_s28  ;;  %v551_v41 = vmax.f32 %v1634_v19, 0.0  ;;  %s1739_s27 = sld [smem:[#allocation9 + $0x88]] }
  0xa8   :  { %v620_v36 = vadd.f32 %v618_v21, %v609_v28  ;;  %v658_v37 = vrot.slane %v656_v29, 1  ;;  %v667_v38 = vrot.slane %v663_v30, 2  ;;  %v678_v39 = vmul.f32 %v677_v35, %v1432_v61  ;;  %s1743_s28 = sld [smem:[#allocation9 + $0x89]] }
  0xa9   :  { %v668_v40 = vrot.slane %v664_v34, 2  ;;  %v674_v43 = vmul.f32 %v673_v31, %v1432_v61  ;;  %v684_v44 = vstv %s1616_s29  ;;  %v695_v48 = vstv %s1621_s30  ;;  %s1748_s29 = sld [smem:[#allocation9 + $0x8a]] }
  0xaa   :  { %v624_v45 = vadd.f32 %v623_v15, %v620_v36  ;;  %v660_v46 = vadd.f32 %v658_v37, %v653_v25  ;;  %v685_v47 = vmul.f32 %v684_v44, %v1432_v61  ;;  %v640_v49 = vsel %vm123_vm1, %v638_v32, %v639_v33  ;;  %s1753_s30 = sld [smem:[#allocation9 + $0x100]] }
  0xab   :  { %v669_v50 = vsel %vm123_vm1, %v667_v38, %v668_v40  ;;  %v686_v51 = vmul.f32 0.0, %v684_v44  ;;  %v699_v52 = vstv %s1627_s8  ;;  %v680_v55 = vrot.slane %v678_v39, 1  ;;  %s1757_s8 = sld [smem:[#allocation9 + $0x101]] }
  0xac   :  { %v631_v53 = vadd.f32 %v629_v23, %v624_v45  ;;  %v671_v54 = vadd.f32 %v669_v50, %v660_v46  ;;  %v689_v56 = vrot.slane %v685_v47, 2  ;;  %v553_v61 = vrot.slane %v551_v41, 1 }
  0xad   :  { %v690_v57 = vrot.slane %v686_v51, 2  ;;  %v696_v58 = vmul.f32 %v695_v48, %v1468_v42  ;;  %v706_v59 = vstv %s1632_s9  ;;  %v700_v0 = vmul.f32 %v699_v52, %v1468_v42  ;;  %s1761_s9 = sld [smem:[#allocation9 + $0x8b]] }
  0xae   :  { %v642_v60 = vadd.f32 %v640_v49, %v631_v53  ;;  %v675_v62 = vadd.f32 %v674_v43, %v671_v54  ;;  %v707_v63 = vmul.f32 %v706_v59, %v1468_v42  ;;  %v708_v1 = vmul.f32 0.0, %v706_v59 }
  0xaf   :  { %v691_v3 = vsel %vm123_vm1, %v689_v56, %v690_v57  ;;  %v717_v4 = vstv %s1637_s2  ;;  %v721_v5 = vstv %s1643_s4  ;;  %v728_v9 = vstv %s1648_s10  ;;  %s1766_s2 = sld [smem:[#allocation9 + $0x102]] }
  0xb0   :  { %v645_v6 = vadd.f32 %v644_v24, %v642_v60  ;;  %v682_v7 = vadd.f32 %v680_v55, %v675_v62  ;;  %v711_v8 = vrot.slane %v707_v63, 2  ;;  %v1691_v42 = vmax.f32 %v456_v14, %v1625_v11  ;;  %s1769_s4 = sld [smem:[#allocation9 + $0x103]] }
  0xb1   :  { %v712_v10 = vrot.slane %v708_v1, 2  ;;  %v729_v12 = vmul.f32 %v728_v9, %v1512_v22  ;;  %v702_v15 = vrot.slane %v700_v0, 1  ;;  %v730_v16 = vmul.f32 0.0, %v728_v9  ;;  %s1772_s10 = sld [smem:[#allocation9 + $0x104]] }
  0xb2   :  { %v693_v13 = vadd.f32 %v691_v3, %v682_v7  ;;  %v747_v17 = vstv %s1654_s12  ;;  %v1699_v18 = vmax.f32 %v551_v41, %v553_v61  ;;  %v646_v19 = vmax.f32 %v645_v6, 0.0  ;;  %s1782_s12 = sld [smem:[#allocation9 + $0x107]] }
  0xb3   :  { %v718_v2 = vmul.f32 %v717_v4, %v1512_v22  ;;  %v722_v14 = vmul.f32 %v721_v5, %v1512_v22  ;;  %v713_v20 = vsel %vm123_vm1, %v711_v8, %v712_v10  ;;  %v750_v21 = vstv %s1659_s0  ;;  %s1786_s0 = sld [smem:[#allocation9 + $0x106]] }
  0xb4   :  { %v697_v11 = vadd.f32 %v696_v58, %v693_v13  ;;  %v757_v23 = vstv %s1663_s13  ;;  %v733_v24 = vrot.slane %v729_v12, 2  ;;  %v748_v25 = vmul.f32 %v747_v17, %v1691_v42  ;;  %s1790_s13 = sld [smem:[#allocation9 + $0x108]] }
  0xb5   :  { %v751_v26 = vmul.f32 %v750_v21, %v1691_v42  ;;  %v758_v27 = vmul.f32 %v757_v23, %v1691_v42  ;;  %v734_v28 = vrot.slane %v730_v16, 2  ;;  %v764_v29 = vstv %s1668_s14  ;;  %s1794_s14 = sld [smem:[#allocation9 + $0x109]] }
  0xb6   :  { %v704_v22 = vadd.f32 %v702_v15, %v697_v11  ;;  %v768_v30 = vstv %s1670_s15  ;;  %v775_v34 = vstv %s1674_s16  ;;  %v648_v35 = vrot.slane %v646_v19, 1  ;;  %s1800_s15 = sld [smem:[#allocation9 + $0x10a]] }
  0xb7   :  { %v753_v31 = vrot.slane %v751_v26, 2  ;;  %v760_v32 = vrot.slane %v758_v27, 4  ;;  %v769_v33 = vmul.f32 %v768_v30, %v1699_v18  ;;  %v724_v37 = vrot.slane %v722_v14, 1  ;;  %s1806_s16 = sld [smem:[#allocation9 + $0x180]] }
  0xb8   :  { %v715_v36 = vadd.f32 %v713_v20, %v704_v22  ;;  %v765_v39 = vmul.f32 %v764_v29, %v1699_v18  ;;  %v776_v41 = vmul.f32 %v775_v34, %v1699_v18  ;;  %v735_v43 = vsel %vm123_vm1, %v733_v24, %v734_v28 }
  0xb9   :  { %v755_v38 = vadd.f32 %v753_v31, %v748_v25  ;;  %v739_v44 = vstv %s1651_s11  ;;  %v771_v46 = vrot.slane %v769_v33, 2  ;;  %v1735_v47 = vmax.f32 %v646_v19, %v648_v35  ;;  %s1775_s11 = sld [smem:[#allocation9 + $0x105]] }
  0xba   :  { %v719_v40 = vadd.f32 %v718_v2, %v715_v36  ;;  %v782_v49 = vstv %s1678_s17  ;;  %v822_v50 = vstv %s1703_s20  ;;  %v778_v52 = vrot.slane %v776_v41, 4  ;;  %s1810_s17 = sld [smem:[#allocation9 + $0x181]] }
  0xbb   :  { %v762_v45 = vadd.f32 %v760_v32, %v755_v38  ;;  %v786_v53 = vstv %s1683_s1  ;;  %v825_v54 = vstv %s1708_s21  ;;  %v823_v56 = vmul.f32 %v822_v50, %v1691_v42  ;;  %s1813_s1 = sld [smem:[#allocation9 + $0x182]] }
  0xbc   :  { %v726_v48 = vadd.f32 %v724_v37, %v719_v40  ;;  %v826_v61 = vmul.f32 %v825_v54, %v1691_v42  ;;  %v832_v57 = vstv %s1713_s22  ;;  %v839_v60 = vstv %s1717_s23  ;;  %s1831_s20 = sld [smem:[#allocation9 + $0x185]] }
  0xbd   :  { %v766_v51 = vadd.f32 %v765_v39, %v762_v45  ;;  %v833_v59 = vmul.f32 %v832_v57, %v1691_v42  ;;  %v843_v62 = vstv %s1721_s24  ;;  %v850_v1 = vstv %s1723_s25  ;;  %s1839_s21 = sld [smem:[#allocation9 + $0x187]] }
  0xbe   :  { %v737_v55 = vadd.f32 %v735_v43, %v726_v48  ;;  %v828_v63 = vrot.slane %v826_v61, 2  ;;  %v844_v3 = vmul.f32 %v843_v62, %v1699_v18  ;;  %v783_v5 = vmul.f32 %v782_v49, %v1735_v47  ;;  %s1843_s22 = sld [smem:[#allocation9 + $0x186]] }
  0xbf   :  { %v773_v58 = vadd.f32 %v771_v46, %v766_v51  ;;  %v787_v6 = vmul.f32 %v786_v53, %v1735_v47  ;;  %v835_v7 = vrot.slane %v833_v59, 4  ;;  %v793_v8 = vstv %s1686_s3  ;;  %s1818_s3 = sld [smem:[#allocation9 + $0x183]] }
  0xc0   :  { %v740_v0 = vadd.f32 %v739_v44, %v737_v55  ;;  %v830_v9 = vadd.f32 %v828_v63, %v823_v56  ;;  %v840_v10 = vmul.f32 %v839_v60, %v1699_v18  ;;  %v851_v12 = vmul.f32 %v850_v1, %v1699_v18  ;;  %s1847_s23 = sld [smem:[#allocation9 + $0x188]] }
  0xc1   :  { %v780_v4 = vadd.f32 %v778_v52, %v773_v58  ;;  %v861_v13 = vstv %s1733_s26  ;;  %v846_v17 = vrot.slane %v844_v3, 2  ;;  %v857_v19 = vstv %s1729_s6  ;;  %s1852_s24 = sld [smem:[#allocation10 + $0x1]] }
  0xc2   :  { %v741_v15 = vmax.f32 %v740_v0, 0.0  ;;  %v837_v16 = vadd.f32 %v835_v7, %v830_v9  ;;  %v789_v14 = vrot.slane %v787_v6, 2  ;;  %v794_v11 = vmul.f32 %v793_v8, %v1735_v47  ;;  %s1859_s25 = sld [smem:[#allocation10 + $0x2]] }
  0xc3   :  { %v784_v2 = vadd.f32 %v783_v5, %v780_v4  ;;  %v853_v21 = vrot.slane %v851_v12, 4  ;;  %v862_v23 = vmul.f32 %v861_v13, %v1735_v47  ;;  %v868_v24 = vstv %s1739_s27  ;;  %s1868_s6 = sld [smem:[#allocation9 + $0x189]] }
  0xc4   :  { %v841_v20 = vadd.f32 %v840_v10, %v837_v16  ;;  %v800_v25 = vstv %s1694_s18  ;;  %v804_v26 = vstv %s1697_s19  ;;  %v858_v27 = vmul.f32 %v857_v19, %v1735_v47  ;;  %s1824_s18 = sld [smem:[#allocation9 + $0x184]] }
  0xc5   :  { %v743_v22 = vrot.slane %v741_v15, 1  ;;  %v897_v29 = vstv %s1753_s30  ;;  %v900_v30 = vstv %s1757_s8  ;;  %v791_v31 = vadd.f32 %v789_v14, %v784_v2  ;;  %s1827_s19 = sld [smem:[#allocation9 + $0x10b]] }
  0xc6   :  { %v848_v28 = vadd.f32 %v846_v17, %v841_v20  ;;  %v796_v32 = vrot.slane %v794_v11, 4  ;;  %v811_v33 = vstv %s1727_s5  ;;  %v869_v34 = vmul.f32 %v868_v24, %v1735_v47  ;;  %s1864_s5 = sld [smem:[#allocation9 + $0x18a]] }
  0xc7   :  { %v864_v36 = vrot.slane %v862_v23, 2  ;;  %v875_v37 = vstv %s1743_s28  ;;  %v879_v38 = vstv %s1748_s29  ;;  %v886_v39 = vstv %s1761_s9  ;;  %s1872_s26 = sld [smem:[#allocation9 + $0x18b]] }
  0xc8   :  { %v855_v35 = vadd.f32 %v853_v21, %v848_v28  ;;  %v898_v41 = vmul.f32 %v897_v29, %v1691_v42  ;;  %v901_v40 = vmul.f32 %v900_v30, %v1691_v42  ;;  %v907_v43 = vstv %s1766_s2  ;;  %s1875_s27 = sld [smem:[#allocation10]] }
  0xc9   :  { %v1802_v44 = vmax.f32 %v741_v15, %v743_v22  ;;  %v908_v46 = vmul.f32 %v907_v43, %v1691_v42  ;;  %v914_v48 = vstv %s1769_s4  ;;  %v871_v49 = vrot.slane %v869_v34, 4  ;;  %s1181_s28 = sld [smem:[#allocation10 + $0x3]] }
  0xca   :  { %v859_v45 = vadd.f32 %v858_v27, %v855_v35  ;;  %v903_v50 = vrot.slane %v901_v40, 2  ;;  %v918_v51 = vstv %s1772_s10  ;;  %v925_v52 = vstv %s1775_s11 }
  0xcb   :  { %v798_v53 = vadd.f32 %v796_v32, %v791_v31  ;;  %v910_v55 = vrot.slane %v908_v46, 4  ;;  %v919_v56 = vmul.f32 %v918_v51, %v1699_v18  ;;  %v915_v57 = vmul.f32 %v914_v48, %v1699_v18 }
  0xcc   :  { %v866_v54 = vadd.f32 %v864_v36, %v859_v45  ;;  %v905_v61 = vadd.f32 %v903_v50, %v898_v41  ;;  %v926_v58 = vmul.f32 %v925_v52, %v1699_v18  ;;  %v936_v59 = vstv %s1782_s12 }
  0xcd   :  { %v801_v60 = vmul.f32 %v800_v25, %v1802_v44  ;;  %v876_v62 = vmul.f32 %v875_v37, %v1802_v44  ;;  %v880_v0 = vmul.f32 %v879_v38, %v1802_v44  ;;  %v932_v63 = vstv %s1786_s0 }
  0xce   :  { %v873_v3 = vadd.f32 %v871_v49, %v866_v54  ;;  %v912_v1 = vadd.f32 %v910_v55, %v905_v61  ;;  %v921_v4 = vrot.slane %v919_v56, 2  ;;  %v943_v5 = vstv %s1790_s13 }
  0xcf   :  { %v937_v6 = vmul.f32 %v936_v59, %v1735_v47  ;;  %v944_v7 = vmul.f32 %v943_v5, %v1735_v47  ;;  %v805_v8 = vmul.f32 %v804_v26, %v1802_v44  ;;  %v1835_v9 = vmul.f32 %v811_v33, %v1802_v44 }
  0xd0   :  { %v916_v10 = vadd.f32 %v915_v57, %v912_v1  ;;  %v928_v12 = vrot.slane %v926_v58, 4  ;;  %v802_v13 = vadd.f32 %v801_v60, %v798_v53  ;;  %v882_v15 = vrot.slane %v880_v0, 2 }
  0xd1   :  { %v887_v16 = vmul.f32 %v886_v39, %v1802_v44  ;;  %v933_v17 = vmul.f32 %v932_v63, %v1735_v47  ;;  %v877_v19 = vadd.f32 %v876_v62, %v873_v3  ;;  %v954_v14 = vstv %s1800_s15 }
  0xd2   :  { %v923_v2 = vadd.f32 %v921_v4, %v916_v10  ;;  %v972_v11 = vstv %s1806_s16  ;;  %v939_v20 = vrot.slane %v937_v6, 2  ;;  %v946_v21 = vrot.slane %v944_v7, 4 }
  0xd3   :  { %v950_v23 = vstv %s1794_s14  ;;  %v975_v24 = vstv %s1810_s17  ;;  %v973_v26 = vmul.f32 %v972_v11, %v1691_v42  ;;  %v982_v22 = vstv %s1813_s1 }
  0xd4   :  { %v930_v25 = vadd.f32 %v928_v12, %v923_v2  ;;  %v976_v27 = vmul.f32 %v975_v24, %v1691_v42  ;;  %v955_v28 = vmul.f32 %v954_v14, %v1802_v44  ;;  %v983_v29 = vmul.f32 %v982_v22, %v1691_v42 }
  0xd5   :  { %v989_v30 = vstv %s1818_s3  ;;  %v993_v31 = vstv %s1824_s18  ;;  %v961_v33 = vstv %s1827_s19  ;;  %v807_v36 = vrot.slane %v805_v8, 2 }
  0xd6   :  { %v934_v32 = vadd.f32 %v933_v17, %v930_v25  ;;  %v978_v34 = vrot.slane %v976_v27, 2  ;;  %v994_v35 = vmul.f32 %v993_v31, %v1699_v18  ;;  %v951_v37 = vmul.f32 %v950_v23, %v1802_v44 }
  0xd7   :  { %v985_v38 = vrot.slane %v983_v29, 4  ;;  %v1000_v39 = vstv %s1831_s20  ;;  %v990_v42 = vmul.f32 %v989_v30, %v1699_v18  ;;  %v884_v45 = vadd.f32 %v882_v15, %v877_v19 }
  0xd8   :  { %v941_v41 = vadd.f32 %v939_v20, %v934_v32  ;;  %v980_v40 = vadd.f32 %v978_v34, %v973_v26  ;;  %v1001_v43 = vmul.f32 %v1000_v39, %v1699_v18  ;;  %v889_v46 = vrot.slane %v887_v16, 4 }
  0xd9   :  { %v962_v48 = vmul.f32 %v961_v33, %v1802_v44  ;;  %v1011_v49 = vstv %s1839_s21  ;;  %v957_v51 = vrot.slane %v955_v28, 2  ;;  %v996_v53 = vrot.slane %v994_v35, 2 }
  0xda   :  { %v948_v50 = vadd.f32 %v946_v21, %v941_v41  ;;  %v987_v52 = vadd.f32 %v985_v38, %v980_v40  ;;  %v809_v54 = vadd.f32 %v807_v36, %v802_v13  ;;  %v814_v55 = vrot.slane %v1835_v9, 4 }
  0xdb   :  { %v1007_v18 = vstv %s1843_s22  ;;  %v1018_v56 = vstv %s1847_s23  ;;  %v1003_v58 = vrot.slane %v1001_v43, 4  ;;  %v1012_v59 = vmul.f32 %v1011_v49, %v1735_v47 }
  0xdc   :  { %v952_v61 = vadd.f32 %v951_v37, %v948_v50  ;;  %v991_v57 = vadd.f32 %v990_v42, %v987_v52  ;;  %v891_v60 = vadd.f32 %v889_v46, %v884_v45  ;;  %v964_v62 = vrot.slane %v962_v48, 4 }
  0xdd   :  { %v1008_v3 = vmul.f32 %v1007_v18, %v1735_v47  ;;  %v1019_v1 = vmul.f32 %v1018_v56, %v1735_v47  ;;  %v893_v4 = vstv %s1852_s24  ;;  %v1029_v5 = vstv %s1864_s5 }
  0xde   :  { %v959_v0 = vadd.f32 %v957_v51, %v952_v61  ;;  %v998_v63 = vadd.f32 %v996_v53, %v991_v57  ;;  %v816_v6 = vadd.f32 %v814_v55, %v809_v54  ;;  %v1014_v8 = vrot.slane %v1012_v59, 2 }
  0xdf   :  { %v968_v10 = vstv %s1859_s25  ;;  %v1025_v12 = vstv %s1868_s6  ;;  %v1036_v13 = vstv %s1872_s26  ;;  %v894_v15 = vadd.f32 %v893_v4, %v891_v60 }
  0xe0   :  { %v1005_v7 = vadd.f32 %v1003_v58, %v998_v63  ;;  %v966_v9 = vadd.f32 %v964_v62, %v959_v0  ;;  %v1021_v17 = vrot.slane %v1019_v1, 4  ;;  %v1030_v19 = vmul.f32 %v1029_v5, %v1802_v44 }
  0xe1   :  { %v818_v2 = vstv %s1875_s27  ;;  %v1026_v11 = vmul.f32 %v1025_v12, %v1802_v44  ;;  %v1037_v47 = vmul.f32 %v1036_v13, %v1802_v44  ;;  %v895_v23 = vmax.f32 %v894_v15, 0.0 }
  0xe2   :  { %v1009_v16 = vadd.f32 %v1008_v3, %v1005_v7  ;;  %v969_v20 = vadd.f32 %v968_v10, %v966_v9  ;;  %v819_v21 = vadd.f32 %v818_v2, %v816_v6  ;;  %v1032_v25 = vrot.slane %v1030_v19, 2 }
  0xe3   :  { %v1039_v27 = vrot.slane %v1037_v47, 4  ;;  %v1047_v30 = vrot.slane %v895_v23, 7  ;;  %v1043_v31 = vstv %s1181_s28 }
  0xe4   :  { %v1016_v14 = vadd.f32 %v1014_v8, %v1009_v16  ;;  %v970_v22 = vmax.f32 %v969_v20, 0.0  ;;  %v820_v28 = vmax.f32 %v819_v21, 0.0 }
  0xe6   :  { %v1023_v24 = vadd.f32 %v1021_v17, %v1016_v14  ;;  %v1050_v33 = vrot.slane %v970_v22, 6  ;;  %v1055_v35 = vsel %vm159_vm2, %v820_v28, %v1047_v30 }
  0xe8   :  { %v1027_v26 = vadd.f32 %v1026_v11, %v1023_v24  ;;  %v1056_v44 = vsel %vm161_vm3, %v1055_v35, %v1050_v33 }
  0xea   :  { %v1034_v29 = vadd.f32 %v1032_v25, %v1027_v26 }
  0xec   :  { %v1041_v32 = vadd.f32 %v1039_v27, %v1034_v29 }
  0xee   :  { %v1044_v34 = vadd.f32 %v1043_v31, %v1041_v32 }
  0xf0   :  { %v1045_v36 = vmax.f32 %v1044_v34, 0.0 }
  0xf2   :  { %v1053_v37 = vrot.slane %v1045_v36, 5 }
  0xf4   :  { %v1057_v38 = vsel %vm163_vm4, %v1056_v44, %v1053_v37 }
  0xf5   :  { %1059 = vst.msk [vmem:[%s1904_s7] sm:$0xf] %vm1058_vm7, %v1057_v38 }
  0xf6   :  { %1064 = vsyncpa [#allocation3], 1 }
  0xf7   :  { %1065 = vsyncpa [#allocation5], 1 }
  0xf8   :  { %1066 = vsyncpa [#allocation8], 1 }
  0xf9   :  { %1067 = vsyncpa [#allocation11], 1 }

</bundles_post_ra>
